<compile_context>
chip_gen: v5e
topology: v5e:2x2
jax: 0.10.0
libtpu: 0.0.40
codegen_flags: <defaults>
</compile_context>

<pallas_src>
import jax
import jax.numpy as jnp
from jax import lax
from jax.experimental import pallas as pl
from jax.experimental.pallas import tpu as pltpu


def bottleneck_kernel(x_ref, w1_ref, s1_ref, b1_ref,
                      w2_ref, s2_ref, b2_ref,
                      w3_ref, s3_ref, b3_ref,
                      out_ref, pad_ref):
  """Whole batch in one invocation; all channel contractions run on the MXU.

  x_ref   : (N, H, W, Cin)           input (NHWC)
  w1_ref  : (Cin, width)             1x1 conv as matmul
  w2_ref  : (9*width, width)         3x3 conv flattened for im2col matmul
  w3_ref  : (width, Cout)            1x1 conv as matmul
  s*/b*   : (1, C)                   folded BatchNorm scale / bias
  out_ref : (N*H*W, Cout)            output activation matrix
  pad_ref : (N, H+2, W+2, width)     VMEM scratch, zero-padded conv2 input
  """
  N, H, W, Cin = x_ref.shape
  width = w1_ref.shape[1]
  M = N * H * W

  x2d = x_ref[...].reshape(M, Cin)          # identity branch + conv1 input

  # ---- conv1 (1x1) + bn1 + relu -------------------------------------------
  t1 = jnp.dot(x2d, w1_ref[...], preferred_element_type=jnp.float32)
  t1 = jnp.maximum(t1 * s1_ref[...] + b1_ref[...], 0.0)        # (M, width)

  # ---- conv2 (3x3, stride=1, pad=1) as a single im2col matmul -------------
  # One-time zero of the (tiny) halo scratch, then write the interior.
  pad_ref[...] = jnp.zeros_like(pad_ref)
  pad_ref[:, pl.ds(1, H), pl.ds(1, W), :] = t1.reshape(N, H, W, width)

  taps = []
  for dh in range(3):                        # static unroll over 3x3 taps
    for dw in range(3):
      tap = pad_ref[:, pl.ds(dh, H), pl.ds(dw, W), :]          # (N, H, W, width)
      taps.append(tap.reshape(M, width))
  patches = jnp.concatenate(taps, axis=-1)                     # (M, 9*width)

  t2 = jnp.dot(patches, w2_ref[...], preferred_element_type=jnp.float32)
  t2 = jnp.maximum(t2 * s2_ref[...] + b2_ref[...], 0.0)        # (M, width)

  # ---- conv3 (1x1) + bn3 ---------------------------------------------------
  t3 = jnp.dot(t2, w3_ref[...], preferred_element_type=jnp.float32)
  t3 = t3 * s3_ref[...] + b3_ref[...]                          # (M, Cout)

  # ---- residual add + relu -------------------------------------------------
  out_ref[...] = jnp.maximum(t3 + x2d, 0.0)


def bottleneck_forward(x_nchw, w1, s1, b1, w2_flat, s2, b2, w3, s3, b3):
  """Wrapper: NCHW in, NCHW out. Single pallas_call, everything in VMEM."""
  x = jnp.transpose(x_nchw, (0, 2, 3, 1)).astype(jnp.float32)  # -> NHWC
  N, H, W, Cin = x.shape
  width = w1.shape[1]
  Cout = w3.shape[1]
  # Identity residual requires matching channel counts (stride=1, no downsample).
  assert Cin == Cout, (Cin, Cout)

  out2d = pl.pallas_call(
      bottleneck_kernel,
      out_shape=jax.ShapeDtypeStruct((N * H * W, Cout), jnp.float32),
      scratch_shapes=[pltpu.VMEM((N, H + 2, W + 2, width), jnp.float32)],
  )(x, w1, s1, b1, w2_flat, s2, b2, w3, s3, b3)

  out_nhwc = out2d.reshape(N, H, W, Cout)
  return jnp.transpose(out_nhwc, (0, 3, 1, 2))                 # -> NCHW


# ------------------------- pure-JAX reference (NCHW) -------------------------
def reference_bottleneck(x, w1_oihw, w2_oihw, w3_oihw, bns):
  def conv(x, w, stride, pad):
    return lax.conv_general_dilated(
        x, w, (stride, stride), [(pad, pad), (pad, pad)],
        dimension_numbers=('NCHW', 'OIHW', 'NCHW'))

  def bn(x, p, eps=1e-5):
    gamma, beta, mean, var = p
    s = gamma / jnp.sqrt(var + eps)
    b = beta - mean * s
    return x * s[None, :, None, None] + b[None, :, None, None]

  relu = lambda t: jnp.maximum(t, 0.0)
  out = relu(bn(conv(x, w1_oihw, 1, 0), bns[0]))
  out = relu(bn(conv(out, w2_oihw, 1, 1), bns[1]))
  out = bn(conv(out, w3_oihw, 1, 0), bns[2])
  return relu(out + x)


if __name__ == "__main__":
  key = jax.random.PRNGKey(0)
  ks = jax.random.split(key, 16)

  # Bottleneck(inplanes=16, planes=4): width = 4, expansion*planes = 16,
  # stride=1, downsample=None  =>  identity add is shape-compatible.
  # N*H*W = 2*8*8 = 128 -> matmul M axis exactly fills one MXU pass.
  N, inplanes, H, W = 2, 16, 8, 8
  planes, expansion = 4, 4
  width = planes
  cout = planes * expansion

  x = jax.random.normal(ks[0], (N, inplanes, H, W), jnp.float32)

  # Conv weights in PyTorch OIHW layout (deterministic synthetic init).
  w1_oihw = jax.random.normal(ks[1], (width, inplanes, 1, 1), jnp.float32) * 0.2
  w2_oihw = jax.random.normal(ks[2], (width, width, 3, 3), jnp.float32) * 0.2
  w3_oihw = jax.random.normal(ks[3], (cout, width, 1, 1), jnp.float32) * 0.2

  def make_bn(kg, kb, km, kv, c):
    gamma = jax.random.uniform(kg, (c,), jnp.float32, 0.5, 1.5)
    beta = jax.random.normal(kb, (c,), jnp.float32) * 0.1
    mean = jax.random.normal(km, (c,), jnp.float32) * 0.1
    var = jax.random.uniform(kv, (c,), jnp.float32, 0.5, 1.5)
    return gamma, beta, mean, var

  bn1 = make_bn(ks[4], ks[5], ks[6], ks[7], width)
  bn2 = make_bn(ks[8], ks[9], ks[10], ks[11], width)
  bn3 = make_bn(ks[12], ks[13], ks[14], ks[15], cout)

  def fold(p, eps=1e-5):
    gamma, beta, mean, var = p
    s = gamma / jnp.sqrt(var + eps)
    b = beta - mean * s
    return s.reshape(1, -1), b.reshape(1, -1)

  s1, b1 = fold(bn1)
  s2, b2 = fold(bn2)
  s3, b3 = fold(bn3)

  # Kernel-layout weights: 1x1 convs as (Cin, Cout) matmuls,
  # 3x3 conv flattened to (kh*kw*cin, cout) for the im2col matmul.
  w1 = jnp.transpose(w1_oihw[:, :, 0, 0], (1, 0))                  # (Cin, width)
  w2_flat = jnp.transpose(w2_oihw, (2, 3, 1, 0)).reshape(9 * width, width)
  w3 = jnp.transpose(w3_oihw[:, :, 0, 0], (1, 0))                  # (width, Cout)

  out = bottleneck_forward(x, w1, s1, b1, w2_flat, s2, b2, w3, s3, b3)
  out = jax.block_until_ready(out)

  ref = reference_bottleneck(x, w1_oihw, w2_oihw, w3_oihw, (bn1, bn2, bn3))
  ref = jax.block_until_ready(ref)

  assert out.shape == (N, cout, H, W), out.shape
  assert jnp.allclose(out, ref, atol=1e-4, rtol=1e-4), (
      float(jnp.max(jnp.abs(out - ref))))
  print("KERNEL_OK")
</pallas_src>

<mosaic_0001>
module attributes {stable_mosaic.version = 11 : i64} {
  func.func @bottleneck_kernel(%arg0: memref<2x8x8x16xf32, #tpu.memory_space<vmem>>, %arg1: memref<16x4xf32, #tpu.memory_space<vmem>>, %arg2: memref<1x4xf32, #tpu.memory_space<vmem>>, %arg3: memref<1x4xf32, #tpu.memory_space<vmem>>, %arg4: memref<36x4xf32, #tpu.memory_space<vmem>>, %arg5: memref<1x4xf32, #tpu.memory_space<vmem>>, %arg6: memref<1x4xf32, #tpu.memory_space<vmem>>, %arg7: memref<4x16xf32, #tpu.memory_space<vmem>>, %arg8: memref<1x16xf32, #tpu.memory_space<vmem>>, %arg9: memref<1x16xf32, #tpu.memory_space<vmem>>, %arg10: memref<128x16xf32, #tpu.memory_space<vmem>>, %arg11: memref<2x10x10x4xf32, #tpu.memory_space<vmem>>) attributes {dimension_semantics = [], scalar_prefetch = 0 : i64, scratch_operands = 1 : i64, tpu.core_type = #tpu.core_type<tc>} {
    %c0 = arith.constant 0 : index
    %c0_0 = arith.constant 0 : index
    %c0_1 = arith.constant 0 : index
    %c0_2 = arith.constant 0 : index
    %0 = vector.load %arg0[%c0, %c0_0, %c0_1, %c0_2] : memref<2x8x8x16xf32, #tpu.memory_space<vmem>>, vector<2x8x8x16xf32>
    %1 = vector.shape_cast %0 : vector<2x8x8x16xf32> to vector<128x16xf32>
    %c0_3 = arith.constant 0 : index
    %c0_4 = arith.constant 0 : index
    %2 = vector.load %arg1[%c0_3, %c0_4] : memref<16x4xf32, #tpu.memory_space<vmem>>, vector<16x4xf32>
    %cst = arith.constant dense<0.000000e+00> : vector<128x4xf32>
    %3 = tpu.matmul %1, %2, %cst {dimension_numbers = #tpu.dot_dimension_numbers<[1], [0], [0], [1], [0, 0, 1, 1], [], []>} : vector<128x16xf32>, vector<16x4xf32>, vector<128x4xf32> -> vector<128x4xf32>
    %c0_5 = arith.constant 0 : index
    %c0_6 = arith.constant 0 : index
    %4 = vector.load %arg2[%c0_5, %c0_6] : memref<1x4xf32, #tpu.memory_space<vmem>>, vector<1x4xf32>
    %5 = vector.broadcast %4 : vector<1x4xf32> to vector<128x4xf32>
    %6 = arith.mulf %3, %5 : vector<128x4xf32>
    %c0_7 = arith.constant 0 : index
    %c0_8 = arith.constant 0 : index
    %7 = vector.load %arg3[%c0_7, %c0_8] : memref<1x4xf32, #tpu.memory_space<vmem>>, vector<1x4xf32>
    %8 = vector.broadcast %7 : vector<1x4xf32> to vector<128x4xf32>
    %9 = arith.addf %6, %8 : vector<128x4xf32>
    %cst_9 = arith.constant 0.000000e+00 : f32
    %10 = vector.broadcast %cst_9 : f32 to vector<128x4xf32>
    %11 = arith.maximumf %9, %10 : vector<128x4xf32>
    %cst_10 = arith.constant 0.000000e+00 : f32
    %12 = vector.broadcast %cst_10 : f32 to vector<2x10x10x4xf32>
    %c0_11 = arith.constant 0 : index
    %c0_12 = arith.constant 0 : index
    %c0_13 = arith.constant 0 : index
    %c0_14 = arith.constant 0 : index
    %13 = vector.load %arg11[%c0_11, %c0_12, %c0_13, %c0_14] : memref<2x10x10x4xf32, #tpu.memory_space<vmem>>, vector<2x10x10x4xf32>
    tpu.vector_store %arg11[%c0_11, %c0_12, %c0_13, %c0_14], %12 {strides = array<i32>} : memref<2x10x10x4xf32, #tpu.memory_space<vmem>>, vector<2x10x10x4xf32>,
    %14 = vector.shape_cast %11 : vector<128x4xf32> to vector<2x8x8x4xf32>
    %c0_15 = arith.constant 0 : index
    %c1 = arith.constant 1 : index
    %c1_16 = arith.constant 1 : index
    %c0_17 = arith.constant 0 : index
    %15 = vector.load %arg11[%c0_15, %c1, %c1_16, %c0_17] : memref<2x10x10x4xf32, #tpu.memory_space<vmem>>, vector<2x8x8x4xf32>
    tpu.vector_store %arg11[%c0_15, %c1, %c1_16, %c0_17], %14 {strides = array<i32>} : memref<2x10x10x4xf32, #tpu.memory_space<vmem>>, vector<2x8x8x4xf32>,
    %c0_18 = arith.constant 0 : index
    %c0_19 = arith.constant 0 : index
    %c0_20 = arith.constant 0 : index
    %c0_21 = arith.constant 0 : index
    %16 = vector.load %arg11[%c0_18, %c0_19, %c0_20, %c0_21] : memref<2x10x10x4xf32, #tpu.memory_space<vmem>>, vector<2x8x8x4xf32>
    %17 = vector.shape_cast %16 : vector<2x8x8x4xf32> to vector<128x4xf32>
    %c0_22 = arith.constant 0 : index
    %c0_23 = arith.constant 0 : index
    %c1_24 = arith.constant 1 : index
    %c0_25 = arith.constant 0 : index
    %18 = vector.load %arg11[%c0_22, %c0_23, %c1_24, %c0_25] : memref<2x10x10x4xf32, #tpu.memory_space<vmem>>, vector<2x8x8x4xf32>
    %19 = vector.shape_cast %18 : vector<2x8x8x4xf32> to vector<128x4xf32>
    %c0_26 = arith.constant 0 : index
    %c0_27 = arith.constant 0 : index
    %c2 = arith.constant 2 : index
    %c0_28 = arith.constant 0 : index
    %20 = vector.load %arg11[%c0_26, %c0_27, %c2, %c0_28] : memref<2x10x10x4xf32, #tpu.memory_space<vmem>>, vector<2x8x8x4xf32>
    %21 = vector.shape_cast %20 : vector<2x8x8x4xf32> to vector<128x4xf32>
    %c0_29 = arith.constant 0 : index
    %c1_30 = arith.constant 1 : index
    %c0_31 = arith.constant 0 : index
    %c0_32 = arith.constant 0 : index
    %22 = vector.load %arg11[%c0_29, %c1_30, %c0_31, %c0_32] : memref<2x10x10x4xf32, #tpu.memory_space<vmem>>, vector<2x8x8x4xf32>
    %23 = vector.shape_cast %22 : vector<2x8x8x4xf32> to vector<128x4xf32>
    %c0_33 = arith.constant 0 : index
    %c1_34 = arith.constant 1 : index
    %c1_35 = arith.constant 1 : index
    %c0_36 = arith.constant 0 : index
    %24 = vector.load %arg11[%c0_33, %c1_34, %c1_35, %c0_36] : memref<2x10x10x4xf32, #tpu.memory_space<vmem>>, vector<2x8x8x4xf32>
    %25 = vector.shape_cast %24 : vector<2x8x8x4xf32> to vector<128x4xf32>
    %c0_37 = arith.constant 0 : index
    %c1_38 = arith.constant 1 : index
    %c2_39 = arith.constant 2 : index
    %c0_40 = arith.constant 0 : index
    %26 = vector.load %arg11[%c0_37, %c1_38, %c2_39, %c0_40] : memref<2x10x10x4xf32, #tpu.memory_space<vmem>>, vector<2x8x8x4xf32>
    %27 = vector.shape_cast %26 : vector<2x8x8x4xf32> to vector<128x4xf32>
    %c0_41 = arith.constant 0 : index
    %c2_42 = arith.constant 2 : index
    %c0_43 = arith.constant 0 : index
    %c0_44 = arith.constant 0 : index
    %28 = vector.load %arg11[%c0_41, %c2_42, %c0_43, %c0_44] : memref<2x10x10x4xf32, #tpu.memory_space<vmem>>, vector<2x8x8x4xf32>
    %29 = vector.shape_cast %28 : vector<2x8x8x4xf32> to vector<128x4xf32>
    %c0_45 = arith.constant 0 : index
    %c2_46 = arith.constant 2 : index
    %c1_47 = arith.constant 1 : index
    %c0_48 = arith.constant 0 : index
    %30 = vector.load %arg11[%c0_45, %c2_46, %c1_47, %c0_48] : memref<2x10x10x4xf32, #tpu.memory_space<vmem>>, vector<2x8x8x4xf32>
    %31 = vector.shape_cast %30 : vector<2x8x8x4xf32> to vector<128x4xf32>
    %c0_49 = arith.constant 0 : index
    %c2_50 = arith.constant 2 : index
    %c2_51 = arith.constant 2 : index
    %c0_52 = arith.constant 0 : index
    %32 = vector.load %arg11[%c0_49, %c2_50, %c2_51, %c0_52] : memref<2x10x10x4xf32, #tpu.memory_space<vmem>>, vector<2x8x8x4xf32>
    %33 = vector.shape_cast %32 : vector<2x8x8x4xf32> to vector<128x4xf32>
    %34 = tpu.concatenate %17, %19, %21, %23, %25, %27, %29, %31, %33 in 1 : vector<128x4xf32>, vector<128x4xf32>, vector<128x4xf32>, vector<128x4xf32>, vector<128x4xf32>, vector<128x4xf32>, vector<128x4xf32>, vector<128x4xf32>, vector<128x4xf32> -> vector<128x36xf32>
    %c0_53 = arith.constant 0 : index
    %c0_54 = arith.constant 0 : index
    %35 = vector.load %arg4[%c0_53, %c0_54] : memref<36x4xf32, #tpu.memory_space<vmem>>, vector<36x4xf32>
    %cst_55 = arith.constant dense<0.000000e+00> : vector<128x4xf32>
    %36 = tpu.matmul %34, %35, %cst_55 {dimension_numbers = #tpu.dot_dimension_numbers<[1], [0], [0], [1], [0, 0, 1, 1], [], []>} : vector<128x36xf32>, vector<36x4xf32>, vector<128x4xf32> -> vector<128x4xf32>
    %c0_56 = arith.constant 0 : index
    %c0_57 = arith.constant 0 : index
    %37 = vector.load %arg5[%c0_56, %c0_57] : memref<1x4xf32, #tpu.memory_space<vmem>>, vector<1x4xf32>
    %38 = vector.broadcast %37 : vector<1x4xf32> to vector<128x4xf32>
    %39 = arith.mulf %36, %38 : vector<128x4xf32>
    %c0_58 = arith.constant 0 : index
    %c0_59 = arith.constant 0 : index
    %40 = vector.load %arg6[%c0_58, %c0_59] : memref<1x4xf32, #tpu.memory_space<vmem>>, vector<1x4xf32>
    %41 = vector.broadcast %40 : vector<1x4xf32> to vector<128x4xf32>
    %42 = arith.addf %39, %41 : vector<128x4xf32>
    %cst_60 = arith.constant 0.000000e+00 : f32
    %43 = vector.broadcast %cst_60 : f32 to vector<128x4xf32>
    %44 = arith.maximumf %42, %43 : vector<128x4xf32>
    %c0_61 = arith.constant 0 : index
    %c0_62 = arith.constant 0 : index
    %45 = vector.load %arg7[%c0_61, %c0_62] : memref<4x16xf32, #tpu.memory_space<vmem>>, vector<4x16xf32>
    %cst_63 = arith.constant dense<0.000000e+00> : vector<128x16xf32>
    %46 = tpu.matmul %44, %45, %cst_63 {dimension_numbers = #tpu.dot_dimension_numbers<[1], [0], [0], [1], [0, 0, 1, 1], [], []>} : vector<128x4xf32>, vector<4x16xf32>, vector<128x16xf32> -> vector<128x16xf32>
    %c0_64 = arith.constant 0 : index
    %c0_65 = arith.constant 0 : index
    %47 = vector.load %arg8[%c0_64, %c0_65] : memref<1x16xf32, #tpu.memory_space<vmem>>, vector<1x16xf32>
    %48 = vector.broadcast %47 : vector<1x16xf32> to vector<128x16xf32>
    %49 = arith.mulf %46, %48 : vector<128x16xf32>
    %c0_66 = arith.constant 0 : index
    %c0_67 = arith.constant 0 : index
    %50 = vector.load %arg9[%c0_66, %c0_67] : memref<1x16xf32, #tpu.memory_space<vmem>>, vector<1x16xf32>
    %51 = vector.broadcast %50 : vector<1x16xf32> to vector<128x16xf32>
    %52 = arith.addf %49, %51 : vector<128x16xf32>
    %53 = arith.addf %52, %1 : vector<128x16xf32>
    %cst_68 = arith.constant 0.000000e+00 : f32
    %54 = vector.broadcast %cst_68 : f32 to vector<128x16xf32>
    %55 = arith.maximumf %53, %54 : vector<128x16xf32>
    %c0_69 = arith.constant 0 : index
    %c0_70 = arith.constant 0 : index
    %56 = vector.load %arg10[%c0_69, %c0_70] : memref<128x16xf32, #tpu.memory_space<vmem>>, vector<128x16xf32>
    tpu.vector_store %arg10[%c0_69, %c0_70], %55 {strides = array<i32>} : memref<128x16xf32, #tpu.memory_space<vmem>>, vector<128x16xf32>,
    return
  }
}

</mosaic_0001>

<bundles_post_ra>
// kernel: tpu_custom_call.1
= control target key start
LH: loop header
LB: loop body
LE: loop exit
PB: predicated region body
PF: predicated region fallthrough
CT: control target
= control target key end

     0   :  { %15 = vsyncpa [#allocation4], 0  ;;  %s1595_s16 = smov [#allocation3]   ;;  %s1596_s18 = smov 128   ;;  %s2448_s0 = inlined_call_operand.hbm [shape: f32[2,8,8,16], index: 0, kind: input, shape index: {}]   ;;  %s2449_s1 = inlined_call_operand.vmem [shape: f32[16,4], index: 1, kind: input, shape index: {}]   ;;  %s2450_s2 = inlined_call_operand.vmem [shape: f32[1,4], index: 2, kind: input, shape index: {}]   ;;  %s2451_s3 = inlined_call_operand.vmem [shape: f32[1,4], index: 3, kind: input, shape index: {}]   ;;  %s2452_s4 = inlined_call_operand.vmem [shape: f32[36,4], index: 4, kind: input, shape index: {}]   ;;  %s2453_s5 = inlined_call_operand.vmem [shape: f32[1,4], index: 5, kind: input, shape index: {}]   ;;  %s2454_s6 = inlined_call_operand.vmem [shape: f32[1,4], index: 6, kind: input, shape index: {}]   ;;  %s2455_s7 = inlined_call_operand.vmem [shape: f32[4,16], index: 7, kind: input, shape index: {}]   ;;  %s2456_s8 = inlined_call_operand.vmem [shape: f32[1,16], index: 8, kind: input, shape index: {}]   ;;  %s2457_s9 = inlined_call_operand.vmem [shape: f32[1,16], index: 9, kind: input, shape index: {}]   ;;  %s2458_s10 = inlined_call_operand.vmem [shape: f32[128,16], index: 10, kind: output, shape index: {}]  }
   0x1   :  { %s20_s15 = sshll.u32 %s2448_s0, 4  ;;  %s22_s17 = sshll.u32 %s1595_s16, 4  ;;  %s21_s15 = int_to_ptr.hbm [resolvable:$true] %s20_s15  ;;  %s23_s17 = int_to_ptr.vmem [resolvable:$true] %s22_s17 }
   0x2   :  { %s1597_s19 = smov 8  }
   0x3   :  { %28 = dma.hbm_to_vmem [thread:$0]  %s21_s15, 2048, %s23_s17, [#allocation4], %s1596_s18, %s1596_s18, %s1597_s19  }
   0x4   :  { %1593 = dma.done.wait [#allocation4], 2048  }
   0x5   :  { %1594 = vsyncadd [#allocation4], 4294965248  ;;  %v68_v0 = vld [vmem:[%s2449_s1 + $0x8] sm:$0xff]  ;;  %v67_v1 = vld [vmem:[%s2449_s1] sm:$0xff]  ;;  %vm69_vm0 = vcmask 130048   ;;  %vm239_vm1 = vcmask 31744  }
   0x6   :  { %132 = vmatpush.msra.mxu0 %v68_v0  ;;  %1528 = vmatpush.msra.mxu3 %v68_v0  ;;  %v51_v2 = vld [vmem:[#allocation3] sm:$0xff]  ;;  %v64_v3 = vld [vmem:[#allocation3 + $0x68] sm:$0xff]  ;;  %v65_v5 = vld [vmem:[#allocation3 + $0x70] sm:$0xff]  ;;  %vm241_vm2 = vcmask 25600   ;;  %v1598_v6 = vmov 0.0   ;;  %s1599_s0 = smov 4  }
   0x7   :  { %v52_v4 = vld [vmem:[#allocation3 + $0x8] sm:$0xff]  ;;  %240 = vst.msk [vmem:[#allocation2] sm:$0xff] %vm239_vm1, %v1598_v6  ;;  %v53_v7 = vld [vmem:[#allocation3 + $0x10] sm:$0xff]  ;;  %v54_v9 = vld [vmem:[#allocation3 + $0x18] sm:$0xff]  ;;  %s1600_s1 = smov 24   ;;  %s1601_s24 = smov 28  }
   0x8   :  { %133 = vmatpush.msra.mxu0 %v67_v1  ;;  %1529 = vmatpush.msra.mxu3 %v67_v1  ;;  %242 = vst.msk [vmem:[#allocation2 + $0x8] sm:$0x3] %vm241_vm2, %v1598_v6  ;;  %v55_v11 = vld [vmem:[#allocation3 + $0x20] sm:$0xff]  ;;  %v56_v14 = vld [vmem:[#allocation3 + $0x28] sm:$0xff]  ;;  %v57_v15 = vld [vmem:[#allocation3 + $0x30] sm:$0xff]  ;;  %s1602_s25 = smov 32  }
   0x9   :  { %1478 = vmatmul.msk.f32.vlgmr.msra.gmra.mxu0 %vm69_vm0, %v51_v2  ;;  %1491 = vmatmul.msk.f32.vlgmr.msra.gmra.mxu3 %vm69_vm0, %v64_v3  ;;  %243 = vst.msk [vmem:[#allocation2 + $0x10] sm:$0xff] %vm239_vm1, %v1598_v6  ;;  %v58_v19 = vld [vmem:[#allocation3 + $0x38] sm:$0xff]  ;;  %v1731_v20 = vld [vmem:[%s2450_s2] ss:$0 sm:$0xff]  ;;  %s1603_s2 = smov 20   ;;  %s1605_s30 = smov 16  }
   0xa   :  { %244 = vst.msk [vmem:[#allocation2 + $0x18] sm:$0x3] %vm241_vm2, %v1598_v6  ;;  %v1736_v21 = vld [vmem:[%s2451_s3] ss:$0 sm:$0xff]  ;;  %s1604_s3 = smov 12   ;;  %v60_v47 = vld [vmem:[#allocation3 + $0x48] sm:$0xff] }
   0xb   :  { %245 = vst.msk [vmem:[#allocation2 + $0x20] sm:$0xff] %vm239_vm1, %v1598_v6  ;;  %v59_v29 = vld [vmem:[#allocation3 + $0x40] sm:$0xff]  ;;  %v61_v50 = vld [vmem:[#allocation3 + $0x50] sm:$0xff]  ;;  %v62_v57 = vld [vmem:[#allocation3 + $0x58] sm:$0xff]  ;;  %vm971_vm3 = vcmask 64512   ;;  %vm1143_vm4 = vcmask 1043456  }
   0xc   :  { %246 = vst.msk [vmem:[#allocation2 + $0x28] sm:$0x3] %vm241_vm2, %v1598_v6  ;;  %v63_v59 = vld [vmem:[#allocation3 + $0x60] sm:$0xff]  ;;  %vm988_vm5 = vcmask 97280   ;;  %vm1021_vm6 = vcmask 162816   ;;  %vm1038_vm7 = vcmask 195584  }
   0xd   :  { %247 = vst.msk [vmem:[#allocation2 + $0x30] sm:$0xff] %vm239_vm1, %v1598_v6  ;;  %vm1055_vm8 = vcmask 228352   ;;  %vm1072_vm9 = vcmask 261120   ;;  %vm1094_vm10 = vcmask 293888  }
   0xe   :  { %248 = vst.msk [vmem:[#allocation2 + $0x38] sm:$0x3] %vm241_vm2, %v1598_v6 }
   0xf   :  { %v314_v8 = vld [vmem:[#allocation2 + $0x1] sm:$0xff]  ;;  %249 = vst.msk [vmem:[#allocation2 + $0x40] sm:$0xff] %vm239_vm1, %v1598_v6 }
  0x10   :  { %459 = vrot.lane.b32.xlu0 %v314_v8, %s1599_s0  ;;  %250 = vst.msk [vmem:[#allocation2 + $0x48] sm:$0x3] %vm241_vm2, %v1598_v6  ;;  %v330_v10 = vld [vmem:[#allocation2 + $0x2] sm:$0xff] }
  0x11   :  { %1479 = vmatmul.msk.f32.gmra.mxu0 %vm69_vm0, %v52_v4  ;;  %1492 = vmatmul.msk.f32.gmra.mxu3 %vm69_vm0, %v65_v5  ;;  %251 = vst.msk [vmem:[#allocation2 + $0x50] sm:$0xff] %vm239_vm1, %v1598_v6 }
  0x12   :  { %252 = vst.msk [vmem:[#allocation2 + $0x58] sm:$0x3] %vm241_vm2, %v1598_v6 }
  0x13   :  { %253 = vst.msk [vmem:[#allocation2 + $0x60] sm:$0xff] %vm239_vm1, %v1598_v6 }
  0x14   :  { %254 = vst.msk [vmem:[#allocation2 + $0x68] sm:$0x3] %vm241_vm2, %v1598_v6 }
  0x15   :  { %255 = vst.msk [vmem:[#allocation2 + $0x70] sm:$0xff] %vm239_vm1, %v1598_v6 }
  0x16   :  { %256 = vst.msk [vmem:[#allocation2 + $0x78] sm:$0x3] %vm241_vm2, %v1598_v6 }
  0x17   :  { %257 = vst.msk [vmem:[#allocation2 + $0x80] sm:$0xff] %vm239_vm1, %v1598_v6 }
  0x18   :  { %258 = vst.msk [vmem:[#allocation2 + $0x88] sm:$0x3] %vm241_vm2, %v1598_v6  ;;  %523 = vrot.lane.b32.xlu0 %v330_v10, %s1597_s19 }
  0x19   :  { %1480 = vmatmul.msk.f32.gmra.mxu0 %vm69_vm0, %v53_v7  ;;  %259 = vst.msk [vmem:[#allocation2 + $0x90] sm:$0xff] %vm239_vm1, %v1598_v6 }
  0x1a   :  { %260 = vst.msk [vmem:[#allocation2 + $0x98] sm:$0x3] %vm241_vm2, %v1598_v6 }
  0x1b   :  { %261 = vst.msk [vmem:[#allocation2 + $0xa0] sm:$0xff] %vm239_vm1, %v1598_v6 }
  0x1c   :  { %262 = vst.msk [vmem:[#allocation2 + $0xa8] sm:$0x3] %vm241_vm2, %v1598_v6 }
  0x1d   :  { %263 = vst.msk [vmem:[#allocation2 + $0xb0] sm:$0xff] %vm239_vm1, %v1598_v6 }
  0x1e   :  { %264 = vst.msk [vmem:[#allocation2 + $0xb8] sm:$0x3] %vm241_vm2, %v1598_v6 }
  0x1f   :  { %265 = vst.msk [vmem:[#allocation2 + $0xc0] sm:$0xff] %vm239_vm1, %v1598_v6 }
  0x20   :  { %266 = vst.msk [vmem:[#allocation2 + $0xc8] sm:$0x3] %vm241_vm2, %v1598_v6  ;;  %v402_v12 = vld [vmem:[#allocation2 + $0x90] sm:$0xff] }
  0x21   :  { %1481 = vmatmul.msk.f32.gmra.mxu0 %vm69_vm0, %v54_v9  ;;  %267 = vst.msk [vmem:[#allocation2 + $0xd0] sm:$0xff] %vm239_vm1, %v1598_v6  ;;  %v418_v13 = vld [vmem:[#allocation2 + $0x91] sm:$0xff]  ;;  %793 = vrot.lane.b32.xlu1 %v402_v12, %s1600_s1 }
  0x22   :  { %268 = vst.msk [vmem:[#allocation2 + $0xd8] sm:$0x3] %vm241_vm2, %v1598_v6  ;;  %857 = vrot.lane.b32.xlu2 %v418_v13, %s1601_s24  ;;  %v434_v18 = vld [vmem:[#allocation2 + $0x92] sm:$0xff]  ;;  %v306_v13 = vld [vmem:[#allocation2 + $0xa0] sm:$0xff] }
  0x23   :  { %269 = vst.msk [vmem:[#allocation2 + $0xe0] sm:$0xff] %vm239_vm1, %v1598_v6  ;;  %v338_v16 = vld [vmem:[#allocation2 + $0xa2] sm:$0xff]  ;;  %921 = vrot.lane.b32.xlu0 %v434_v18, %s1602_s25 }
  0x24   :  { %270 = vst.msk [vmem:[#allocation2 + $0xe8] sm:$0x3] %vm241_vm2, %v1598_v6  ;;  %v322_v17 = vld [vmem:[#allocation2 + $0xa1] sm:$0xff] }
  0x25   :  { %271 = vst.msk [vmem:[#allocation2 + $0xf0] sm:$0xff] %vm239_vm1, %v1598_v6 }
  0x26   :  { %272 = vst.msk [vmem:[#allocation2 + $0xf8] sm:$0x3] %vm241_vm2, %v1598_v6 }
  0x27   :  { %273 = vst.msk [vmem:[#allocation2 + $0x100] sm:$0xff] %vm239_vm1, %v1598_v6 }
  0x28   :  { %274 = vst.msk [vmem:[#allocation2 + $0x108] sm:$0x3] %vm241_vm2, %v1598_v6 }
  0x29   :  { %1482 = vmatmul.msk.f32.gmra.mxu0 %vm69_vm0, %v55_v11  ;;  %275 = vst.msk [vmem:[#allocation2 + $0x110] sm:$0xff] %vm239_vm1, %v1598_v6  ;;  %475 = vrot.lane.b32.xlu1 %v322_v17, %s1599_s0 }
  0x2a   :  { %276 = vst.msk [vmem:[#allocation2 + $0x118] sm:$0x3] %vm241_vm2, %v1598_v6  ;;  %539 = vrot.lane.b32.xlu2 %v338_v16, %s1597_s19 }
  0x2b   :  { %277 = vst.msk [vmem:[#allocation2 + $0x120] sm:$0xff] %vm239_vm1, %v1598_v6 }
  0x2c   :  { %278 = vst.msk [vmem:[#allocation2 + $0x128] sm:$0x3] %vm241_vm2, %v1598_v6 }
  0x2d   :  { %279 = vst.msk [vmem:[#allocation2 + $0x130] sm:$0xff] %vm239_vm1, %v1598_v6 }
  0x2e   :  { %280 = vst.msk [vmem:[#allocation2 + $0x138] sm:$0x3] %vm241_vm2, %v1598_v6 }
  0x31   :  { %1483 = vmatmul.msk.f32.gmra.mxu0 %vm69_vm0, %v56_v14 }
  0x39   :  { %1484 = vmatmul.msk.f32.gmra.mxu0 %vm69_vm0, %v57_v15 }
  0x41   :  { %1485 = vmatmul.msk.f32.gmra.mxu0 %vm69_vm0, %v58_v19 }
  0x49   :  { %1486 = vmatmul.msk.f32.gmra.mxu0 %vm69_vm0, %v59_v29 }
  0x51   :  { %1487 = vmatmul.msk.f32.gmra.mxu0 %vm69_vm0, %v60_v47  ;;  %v1091_v47 = vld [vmem:[%s2452_s4 + $0x10] sm:$0xff] }
  0x59   :  { %1488 = vmatmul.msk.f32.gmra.mxu0 %vm69_vm0, %v61_v50  ;;  %v1090_v50 = vld [vmem:[%s2452_s4 + $0x8] sm:$0xff] }
  0x61   :  { %1489 = vmatmul.msk.f32.gmra.mxu0 %vm69_vm0, %v62_v57  ;;  %v1089_v57 = vld [vmem:[%s2452_s4] sm:$0xff] }
  0x69   :  { %1490 = vmatmul.msk.f32.gmra.mxu0 %vm69_vm0, %v63_v59 }
  0x7c   :  { %v1821_v10 = vpop.permute.xlu2 %857 }
  0x84   :  { %v540_v16 = vpop.permute.xlu2 %539 }
  0x86   :  { %v135_v22 = vpop.f32.mrf.mxu0 }
  0x87   :  { %v187_v23 = vmul.f32 %v1731_v20, %v135_v22 }
  0x89   :  { %v207_v24 = vadd.f32 %v1736_v21, %v187_v23  ;;  %v66_v23 = vld [vmem:[#allocation3 + $0x78] sm:$0xff] }
  0x8a   :  { %1493 = vmatmul.msk.f32.gmra.mxu3 %vm69_vm0, %v66_v23 }
  0x8b   :  { %v223_v25 = vmax.f32 %v207_v24, 0.0  ;;  %v1836_v24 = vpop.permute.xlu0 %459 }
  0x8c   :  { %v174_v26 = vpop.f32.mrf.mxu3 }
  0x8d   :  { %282 = vst.msk [vmem:[#allocation2 + $0x11] sm:$0xff] %vm239_vm1, %v223_v25  ;;  %v200_v27 = vmul.f32 %v1731_v20, %v174_v26 }
  0x8e   :  { %v138_v28 = vpop.f32.mrf.mxu0 }
  0x8f   :  { %v220_v30 = vadd.f32 %v1736_v21, %v200_v27  ;;  %v188_v31 = vmul.f32 %v1731_v20, %v138_v28 }
  0x91   :  { %v236_v32 = vmax.f32 %v220_v30, 0.0  ;;  %v208_v33 = vadd.f32 %v1736_v21, %v188_v31 }
  0x93   :  { %295 = vst.msk [vmem:[#allocation2 + $0x101] sm:$0xff] %vm239_vm1, %v236_v32  ;;  %v224_v34 = vmax.f32 %v208_v33, 0.0  ;;  %v1819_v9 = vpop.permute.xlu1 %793  ;;  %v1847_v30 = vpop.permute.xlu0 %523 }
  0x94   :  { %v378_v35 = vld [vmem:[#allocation2 + $0x12] sm:$0xff]  ;;  %v177_v38 = vpop.f32.mrf.mxu3 }
  0x95   :  { %v1747_v36 = vld [vmem:[#allocation2 + $0x10] sm:$0xff]  ;;  %715 = vrot.lane.b32.xlu2 %v378_v35, %s1603_s2  ;;  %283 = vst.msk [vmem:[#allocation2 + $0x21] sm:$0xff] %vm239_vm1, %v224_v34  ;;  %525 = vrot.lane.b32.xlu0 %v378_v35, %s1597_s19  ;;  %v201_v40 = vmul.f32 %v1731_v20, %v177_v38 }
  0x96   :  { %587 = vrot.lane.b32.xlu1 %v1747_v36, %s1604_s3  ;;  %v141_v37 = vpop.f32.mrf.mxu0  ;;  %v362_v46 = vld [vmem:[#allocation2 + $0x11] sm:$0xff] }
  0x97   :  { %v189_v39 = vmul.f32 %v1731_v20, %v141_v37  ;;  %v221_v42 = vadd.f32 %v1736_v21, %v201_v40 }
  0x99   :  { %v209_v41 = vadd.f32 %v1736_v21, %v189_v39  ;;  %v237_v45 = vmax.f32 %v221_v42, 0.0 }
  0x9a   :  { %v1758_v43 = vld [vmem:[#allocation2 + $0x102] sm:$0xff] }
  0x9b   :  { %v225_v44 = vmax.f32 %v209_v41, 0.0  ;;  %296 = vst.msk [vmem:[#allocation2 + $0x111] sm:$0xff] %vm239_vm1, %v237_v45  ;;  %v407_v48 = vld [vmem:[#allocation2 + $0x100] sm:$0xff]  ;;  %v476_v14 = vpop.permute.xlu1 %475  ;;  %v1861_v33 = vpop.permute.xlu0 %921 }
  0x9c   :  { %v1774_v53 = vld [vmem:[#allocation2 + $0x20] sm:$0xff]  ;;  %v963_v15 = vsel %vm239_vm1, %v306_v13, %v476_v14 }
  0x9d   :  { %461 = vrot.lane.b32.xlu2 %v362_v46, %s1599_s0  ;;  %284 = vst.msk [vmem:[#allocation2 + $0x31] sm:$0xff] %vm239_vm1, %v225_v44  ;;  %931 = vrot.lane.b32.xlu0 %v1758_v43, %s1602_s25  ;;  %v411_v54 = vld [vmem:[#allocation2 + $0x21] sm:$0xff]  ;;  %v1828_v17 = vsel %vm971_vm3, %v963_v15, %v540_v16 }
  0x9e   :  { %651 = vrot.lane.b32.xlu1 %v362_v46, %s1605_s30  ;;  %v144_v49 = vpop.f32.mrf.mxu0  ;;  %v1776_v56 = vld [vmem:[#allocation2 + $0x101] sm:$0xff]  ;;  %v1092_v46 = vld [vmem:[%s2452_s4 + $0x18] sm:$0xff] }
  0x9f   :  { %v190_v51 = vmul.f32 %v1731_v20, %v144_v49  ;;  %v379_v58 = vld [vmem:[#allocation2 + $0x22] sm:$0xff] }
  0xa0   :  { %v1093_v45 = vld [vmem:[%s2452_s4 + $0x20] sm:$0xf] }
  0xa1   :  { %v210_v52 = vadd.f32 %v1736_v21, %v190_v51  ;;  %1494 = vmatpush.msk.msra.mxu1 %vm1143_vm4, %v1093_v45  ;;  %1530 = vmatpush.msk.msrb.mxu3 %vm1143_vm4, %v1093_v45 }
  0xa2   :  { %v1795_v0 = vld [vmem:[#allocation2 + $0x110] sm:$0xff] }
  0xa3   :  { %v226_v55 = vmax.f32 %v210_v52, 0.0  ;;  %1159 = vmatpush.msra.mxu1 %v1092_v46  ;;  %1531 = vmatpush.msrb.mxu3 %v1092_v46 }
  0xa4   :  { %v428_v60 = vld [vmem:[#allocation2 + $0x32] sm:$0xff] }
  0xa5   :  { %613 = vrot.lane.b32.xlu2 %v407_v48, %s1604_s3  ;;  %741 = vrot.lane.b32.xlu0 %v1758_v43, %s1603_s2  ;;  %285 = vst.msk [vmem:[#allocation2 + $0x41] sm:$0xff] %vm239_vm1, %v226_v55  ;;  %v1797_v1 = vld [vmem:[#allocation2 + $0x30] sm:$0xff] }
  0xa6   :  { %803 = vrot.lane.b32.xlu1 %v407_v48, %s1600_s1  ;;  %v147_v61 = vpop.f32.mrf.mxu0  ;;  %v412_v3 = vld [vmem:[#allocation2 + $0x31] sm:$0xff]  ;;  %1160 = vmatpush.msra.mxu1 %v1091_v47 }
  0xa7   :  { %v191_v62 = vmul.f32 %v1731_v20, %v147_v61  ;;  %1532 = vmatpush.msrb.mxu3 %v1091_v47 }
  0xa8   :  { %1161 = vmatpush.msra.mxu1 %v1090_v50 }
  0xa9   :  { %v211_v63 = vadd.f32 %v1736_v21, %v191_v62  ;;  %1533 = vmatpush.msrb.mxu3 %v1090_v50 }
  0xaa   :  { %1162 = vmatpush.msra.mxu1 %v1089_v57 }
  0xab   :  { %v227_v2 = vmax.f32 %v211_v63, 0.0  ;;  %1534 = vmatpush.msrb.mxu3 %v1089_v57 }
  0xac   :  { %v1811_v7 = vld [vmem:[#allocation2 + $0x40] sm:$0xff] }
  0xad   :  { %779 = vrot.lane.b32.xlu2 %v1774_v53, %s1600_s1  ;;  %843 = vrot.lane.b32.xlu0 %v411_v54, %s1601_s24  ;;  %286 = vst.msk [vmem:[#allocation2 + $0x51] sm:$0xff] %vm239_vm1, %v227_v2  ;;  %v429_v11 = vld [vmem:[#allocation2 + $0x42] sm:$0xff] }
  0xae   :  { %867 = vrot.lane.b32.xlu1 %v1776_v56, %s1601_s24  ;;  %v150_v4 = vpop.f32.mrf.mxu0  ;;  %v365_v12 = vld [vmem:[#allocation2 + $0x41] sm:$0xff] }
  0xaf   :  { %v192_v5 = vmul.f32 %v1731_v20, %v150_v4 }
  0xb1   :  { %v212_v6 = vadd.f32 %v1736_v21, %v192_v5 }
  0xb3   :  { %v228_v8 = vmax.f32 %v212_v6, 0.0 }
  0xb4   :  { %v414_v25 = vld [vmem:[#allocation2 + $0x51] sm:$0xff] }
  0xb5   :  { %653 = vrot.lane.b32.xlu2 %v411_v54, %s1605_s30  ;;  %717 = vrot.lane.b32.xlu0 %v379_v58, %s1603_s2  ;;  %287 = vst.msk [vmem:[#allocation2 + $0x61] sm:$0xff] %vm239_vm1, %v228_v8  ;;  %v1845_v28 = vld [vmem:[#allocation2 + $0x50] sm:$0xff] }
  0xb6   :  { %677 = vrot.lane.b32.xlu1 %v1776_v56, %s1605_s30  ;;  %v153_v18 = vpop.f32.mrf.mxu0  ;;  %v382_v29 = vld [vmem:[#allocation2 + $0x52] sm:$0xff] }
  0xb7   :  { %v193_v19 = vmul.f32 %v1731_v20, %v153_v18 }
  0xb9   :  { %v213_v22 = vadd.f32 %v1736_v21, %v193_v19 }
  0xbb   :  { %v229_v26 = vmax.f32 %v213_v22, 0.0 }
  0xbc   :  { %v1855_v32 = vld [vmem:[#allocation2 + $0x62] sm:$0xff] }
  0xbd   :  { %527 = vrot.lane.b32.xlu2 %v379_v58, %s1597_s19  ;;  %909 = vrot.lane.b32.xlu0 %v428_v60, %s1602_s25  ;;  %288 = vst.msk [vmem:[#allocation2 + $0x71] sm:$0xff] %vm239_vm1, %v229_v26  ;;  %v1867_v39 = vld [vmem:[#allocation2 + $0x60] sm:$0xff] }
  0xbe   :  { %907 = vrot.lane.b32.xlu1 %v379_v58, %s1602_s25  ;;  %v156_v34 = vpop.f32.mrf.mxu0  ;;  %v415_v48 = vld [vmem:[#allocation2 + $0x61] sm:$0xff] }
  0xbf   :  { %v194_v37 = vmul.f32 %v1731_v20, %v156_v34 }
  0xc1   :  { %v214_v38 = vadd.f32 %v1736_v21, %v194_v37 }
  0xc3   :  { %v230_v40 = vmax.f32 %v214_v38, 0.0 }
  0xc4   :  { %v1905_v59 = vld [vmem:[#allocation2 + $0x70] sm:$0xff] }
  0xc5   :  { %805 = vrot.lane.b32.xlu2 %v1795_v0, %s1600_s1  ;;  %591 = vrot.lane.b32.xlu0 %v1797_v1, %s1604_s3  ;;  %289 = vst.msk [vmem:[#allocation2 + $0x81] sm:$0xff] %vm239_vm1, %v230_v40  ;;  %v432_v2 = vld [vmem:[#allocation2 + $0x72] sm:$0xff] }
  0xc6   :  { %589 = vrot.lane.b32.xlu1 %v1774_v53, %s1604_s3  ;;  %v159_v49 = vpop.f32.mrf.mxu0 }
  0xcd   :  { %845 = vrot.lane.b32.xlu2 %v412_v3, %s1601_s24  ;;  %465 = vrot.lane.b32.xlu0 %v412_v3, %s1599_s0 }
  0xce   :  { %463 = vrot.lane.b32.xlu1 %v411_v54, %s1599_s0  ;;  %v195_v54 = vmul.f32 %v1731_v20, %v159_v49  ;;  %v162_v4 = vpop.f32.mrf.mxu0  ;;  %v401_v49 = vld [vmem:[#allocation2 + $0x80] sm:$0xff] }
  0xcf   :  { %v196_v8 = vmul.f32 %v1731_v20, %v162_v4 }
  0xd0   :  { %v215_v58 = vadd.f32 %v1736_v21, %v195_v54 }
  0xd1   :  { %v216_v13 = vadd.f32 %v1736_v21, %v196_v8 }
  0xd3   :  { %v232_v15 = vmax.f32 %v216_v13, 0.0 }
  0xd5   :  { %719 = vrot.lane.b32.xlu2 %v428_v60, %s1603_s2  ;;  %783 = vrot.lane.b32.xlu0 %v1811_v7, %s1600_s1  ;;  %291 = vst.msk [vmem:[#allocation2 + $0xc1] sm:$0xff] %vm239_vm1, %v232_v15 }
  0xd6   :  { %781 = vrot.lane.b32.xlu1 %v1797_v1, %s1600_s1  ;;  %v165_v18 = vpop.f32.mrf.mxu0 }
  0xdd   :  { %911 = vrot.lane.b32.xlu2 %v429_v11, %s1602_s25  ;;  %657 = vrot.lane.b32.xlu0 %v365_v12, %s1605_s30 }
  0xde   :  { %655 = vrot.lane.b32.xlu1 %v412_v3, %s1605_s30  ;;  %v368_v3 = vld [vmem:[#allocation2 + $0x71] sm:$0xff]  ;;  %v168_v38 = vpop.f32.mrf.mxu0 }
  0xdf   :  { %v198_v45 = vmul.f32 %v1731_v20, %v168_v38  ;;  %v2004_v38 = vld [vmem:[#allocation2 + $0xc0] sm:$0xff] }
  0xe5   :  { %593 = vrot.lane.b32.xlu2 %v1811_v7, %s1604_s3  ;;  %531 = vrot.lane.b32.xlu0 %v429_v11, %s1597_s19 }
  0xe6   :  { %529 = vrot.lane.b32.xlu1 %v428_v60, %s1597_s19  ;;  %v231_v60 = vmax.f32 %v215_v58, 0.0 }
  0xe8   :  { %290 = vst.msk [vmem:[#allocation2 + $0xb1] sm:$0xff] %vm239_vm1, %v231_v60 }
  0xed   :  { %467 = vrot.lane.b32.xlu2 %v365_v12, %s1599_s0  ;;  %849 = vrot.lane.b32.xlu0 %v414_v25, %s1601_s24 }
  0xee   :  { %847 = vrot.lane.b32.xlu1 %v365_v12, %s1601_s24 }
  0xef   :  { %v1843_v27 = vpop.permute.xlu2 %715  ;;  %v370_v4 = vld [vmem:[#allocation2 + $0xb1] sm:$0xff] }
  0xf5   :  { %785 = vrot.lane.b32.xlu2 %v1845_v28, %s1600_s1  ;;  %723 = vrot.lane.b32.xlu0 %v382_v29, %s1603_s2 }
  0xf6   :  { %721 = vrot.lane.b32.xlu1 %v429_v11, %s1603_s2  ;;  %v298_v11 = vld [vmem:[#allocation2] sm:$0xff] }
  0xf7   :  { %v1853_v31 = vpop.permute.xlu2 %461  ;;  %v955_v14 = vsel %vm239_vm1, %v298_v11, %v1836_v24  ;;  %v197_v24 = vmul.f32 %v1731_v20, %v165_v18 }
  0xf8   :  { %v972_v16 = vsel %vm971_vm3, %v955_v14, %v1847_v30 }
  0xfd   :  { %659 = vrot.lane.b32.xlu2 %v414_v25, %s1605_s30  ;;  %915 = vrot.lane.b32.xlu0 %v1855_v32, %s1602_s25 }
  0xfe   :  { %913 = vrot.lane.b32.xlu1 %v382_v29, %s1602_s25 }
  0xff   :  { %v1863_v35 = vpop.permute.xlu2 %613 }
 0x105   :  { %533 = vrot.lane.b32.xlu2 %v382_v29, %s1597_s19  ;;  %597 = vrot.lane.b32.xlu0 %v1867_v39, %s1604_s3  ;;  %v217_v29 = vadd.f32 %v1736_v21, %v197_v24 }
 0x106   :  { %595 = vrot.lane.b32.xlu1 %v1845_v28, %s1604_s3 }
 0x107   :  { %v1875_v42 = vpop.permute.xlu2 %779  ;;  %v1877_v44 = vpop.permute.xlu0 %525  ;;  %v233_v34 = vmax.f32 %v217_v29, 0.0 }
 0x108   :  { %v588_v41 = vpop.permute.xlu1 %587 }
 0x109   :  { %v989_v19 = vsel %vm988_vm5, %v972_v16, %v588_v41  ;;  %292 = vst.msk [vmem:[#allocation2 + $0xd1] sm:$0xff] %vm239_vm1, %v233_v34  ;;  %v386_v16 = vld [vmem:[#allocation2 + $0xb2] sm:$0xff] }
 0x10d   :  { %851 = vrot.lane.b32.xlu2 %v415_v48, %s1601_s24  ;;  %471 = vrot.lane.b32.xlu0 %v415_v48, %s1599_s0 }
 0x10e   :  { %469 = vrot.lane.b32.xlu1 %v414_v25, %s1599_s0 }
 0x10f   :  { %v1896_v52 = vpop.permute.xlu2 %653  ;;  %v1899_v55 = vpop.permute.xlu0 %931 }
 0x110   :  { %v652_v51 = vpop.permute.xlu1 %651 }
 0x111   :  { %v1005_v25 = vsel %vm69_vm0, %v989_v19, %v652_v51  ;;  %v171_v51 = vpop.f32.mrf.mxu0 }
 0x112   :  { %v1022_v30 = vsel %vm1021_vm6, %v1005_v25, %v1843_v27  ;;  %v199_v58 = vmul.f32 %v1731_v20, %v171_v51 }
 0x113   :  { %v1039_v37 = vsel %vm1038_vm7, %v1022_v30, %v1875_v42  ;;  %v385_v42 = vld [vmem:[#allocation2 + $0x82] sm:$0xff]  ;;  %v1993_v30 = vld [vmem:[#allocation2 + $0xb0] sm:$0xff] }
 0x115   :  { %725 = vrot.lane.b32.xlu2 %v1855_v32, %s1603_s2  ;;  %789 = vrot.lane.b32.xlu0 %v1905_v59, %s1600_s1 }
 0x116   :  { %787 = vrot.lane.b32.xlu1 %v1867_v39, %s1600_s1 }
 0x117   :  { %v1916_v62 = vpop.permute.xlu2 %527  ;;  %v1918_v63 = vpop.permute.xlu0 %741 }
 0x118   :  { %v1914_v61 = vpop.permute.xlu1 %803 }
 0x11d   :  { %917 = vrot.lane.b32.xlu2 %v432_v2, %s1602_s25  ;;  %663 = vrot.lane.b32.xlu0 %v368_v3, %s1605_s30 }
 0x11e   :  { %661 = vrot.lane.b32.xlu1 %v415_v48, %s1605_s30  ;;  %v218_v48 = vadd.f32 %v1736_v21, %v198_v45 }
 0x11f   :  { %v1925_v6 = vpop.permute.xlu2 %805  ;;  %v844_v12 = vpop.permute.xlu0 %843 }
 0x120   :  { %v1923_v5 = vpop.permute.xlu1 %867  ;;  %v1056_v27 = vsel %vm1055_vm8, %v1039_v37, %v844_v12  ;;  %v234_v50 = vmax.f32 %v218_v48, 0.0  ;;  %v2002_v37 = vld [vmem:[#allocation2 + $0xc2] sm:$0xff] }
 0x122   :  { %293 = vst.msk [vmem:[#allocation2 + $0xe1] sm:$0xff] %vm239_vm1, %v234_v50 }
 0x125   :  { %599 = vrot.lane.b32.xlu2 %v1905_v59, %s1604_s3  ;;  %537 = vrot.lane.b32.xlu0 %v432_v2, %s1597_s19 }
 0x126   :  { %535 = vrot.lane.b32.xlu1 %v1855_v32, %s1597_s19  ;;  %v417_v32 = vld [vmem:[#allocation2 + $0x81] sm:$0xff] }
 0x127   :  { %v1942_v23 = vpop.permute.xlu2 %845  ;;  %v718_v26 = vpop.permute.xlu0 %717 }
 0x128   :  { %v1940_v22 = vpop.permute.xlu1 %677 }
 0x129   :  { %v2018_v48 = vld [vmem:[#allocation2 + $0xe1] sm:$0xff] }
 0x12d   :  { %473 = vrot.lane.b32.xlu2 %v368_v3, %s1599_s0  ;;  %855 = vrot.lane.b32.xlu0 %v417_v32, %s1601_s24 }
 0x12e   :  { %853 = vrot.lane.b32.xlu1 %v368_v3, %s1601_s24  ;;  %v219_v3 = vadd.f32 %v1736_v21, %v199_v58 }
 0x12f   :  { %v1956_v41 = vpop.permute.xlu2 %719  ;;  %v910_v46 = vpop.permute.xlu0 %909 }
 0x130   :  { %v908_v40 = vpop.permute.xlu1 %907  ;;  %v235_v8 = vmax.f32 %v219_v3, 0.0 }
 0x131   :  { %v1073_v47 = vsel %vm1072_vm9, %v1056_v27, %v908_v40 }
 0x132   :  { %1495 = vmatmul.msk.f32.vlgmr.msra.gmra.mxu1 %vm1094_vm10, %v1073_v47  ;;  %294 = vst.msk [vmem:[#allocation2 + $0xf1] sm:$0xff] %vm239_vm1, %v235_v8  ;;  %v2041_v8 = vld [vmem:[#allocation2 + $0xd0] sm:$0xff] }
 0x135   :  { %791 = vrot.lane.b32.xlu2 %v401_v49, %s1600_s1  ;;  %729 = vrot.lane.b32.xlu0 %v385_v42, %s1603_s2 }
 0x136   :  { %727 = vrot.lane.b32.xlu1 %v432_v2, %s1603_s2  ;;  %v956_v2 = vsel %vm239_vm1, %v1747_v36, %v1853_v31 }
 0x137   :  { %v912_v57 = vpop.permute.xlu2 %911  ;;  %v592_v60 = vpop.permute.xlu0 %591  ;;  %v973_v13 = vsel %vm971_vm3, %v956_v2, %v1877_v44 }
 0x138   :  { %v590_v54 = vpop.permute.xlu1 %589 }
 0x139   :  { %v990_v15 = vsel %vm988_vm5, %v973_v13, %v590_v54  ;;  %v2037_v3 = vld [vmem:[#allocation2 + $0xf1] sm:$0xff] }
 0x13a   :  { %v1006_v18 = vsel %vm69_vm0, %v990_v15, %v1896_v52  ;;  %v1991_v52 = vld [vmem:[#allocation2 + $0xc1] sm:$0xff]  ;;  %v2052_v15 = vld [vmem:[#allocation2 + $0xf0] sm:$0xff] }
 0x13b   :  { %v1023_v36 = vsel %vm1021_vm6, %v1006_v18, %v718_v26  ;;  %v2057_v18 = vld [vmem:[#allocation2 + $0xe2] sm:$0xff] }
 0x13d   :  { %665 = vrot.lane.b32.xlu2 %v417_v32, %s1605_s30  ;;  %667 = vrot.lane.b32.xlu0 %v370_v4, %s1605_s30 }
 0x13e   :  { %919 = vrot.lane.b32.xlu1 %v385_v42, %s1602_s25 }
 0x13f   :  { %v594_v12 = vpop.permute.xlu2 %593  ;;  %v466_v14 = vpop.permute.xlu0 %465 }
 0x140   :  { %v464_v11 = vpop.permute.xlu1 %463 }
 0x145   :  { %731 = vrot.lane.b32.xlu2 %v386_v16, %s1603_s2  ;;  %477 = vrot.lane.b32.xlu0 %v370_v4, %s1599_s0  ;;  %v2039_v4 = vld [vmem:[#allocation2 + $0xd1] sm:$0xff] }
 0x146   :  { %601 = vrot.lane.b32.xlu1 %v401_v49, %s1604_s3 }
 0x147   :  { %v1984_v19 = vpop.permute.xlu2 %467  ;;  %v784_v24 = vpop.permute.xlu0 %783 }
 0x148   :  { %v782_v31 = vpop.permute.xlu1 %781 }
 0x149   :  { %v1040_v44 = vsel %vm1038_vm7, %v1023_v36, %v782_v31  ;;  %v180_v36 = vpop.f32.mrf.mxu3 }
 0x14a   :  { %v1057_v25 = vsel %vm1055_vm8, %v1040_v44, %v1942_v23  ;;  %v957_v23 = vsel %vm239_vm1, %v1774_v53, %v464_v11 }
 0x14b   :  { %v1074_v29 = vsel %vm1072_vm9, %v1057_v25, %v910_v46  ;;  %v974_v27 = vsel %vm971_vm3, %v957_v23, %v1916_v62  ;;  %v202_v25 = vmul.f32 %v1731_v20, %v180_v36  ;;  %v2072_v23 = vld [vmem:[#allocation2 + $0xd2] sm:$0xff] }
 0x14c   :  { %1496 = vmatmul.msk.f32.gmra.mxu1 %vm1094_vm10, %v1074_v29  ;;  %v991_v53 = vsel %vm988_vm5, %v974_v27, %v592_v60 }
 0x14d   :  { %541 = vrot.lane.b32.xlu2 %v386_v16, %s1597_s19  ;;  %859 = vrot.lane.b32.xlu0 %v1991_v52, %s1601_s24  ;;  %v2054_v16 = vld [vmem:[#allocation2 + $0xf2] sm:$0xff] }
 0x14e   :  { %603 = vrot.lane.b32.xlu1 %v1993_v30, %s1604_s3 }
 0x14f   :  { %v786_v32 = vpop.permute.xlu2 %785  ;;  %v658_v34 = vpop.permute.xlu0 %657 }
 0x150   :  { %v656_v26 = vpop.permute.xlu1 %655 }
 0x151   :  { %v1007_v47 = vsel %vm69_vm0, %v991_v53, %v656_v26  ;;  %v2079_v53 = vld [vmem:[#allocation2 + $0x111] sm:$0xff] }
 0x152   :  { %v1024_v62 = vsel %vm1021_vm6, %v1007_v47, %v1956_v41  ;;  %v958_v41 = vsel %vm239_vm1, %v1797_v1, %v466_v14 }
 0x153   :  { %v1041_v42 = vsel %vm1038_vm7, %v1024_v62, %v784_v24 }
 0x155   :  { %923 = vrot.lane.b32.xlu2 %v2002_v37, %s1602_s25  ;;  %733 = vrot.lane.b32.xlu0 %v2002_v37, %s1603_s2 }
 0x156   :  { %795 = vrot.lane.b32.xlu1 %v2004_v38, %s1600_s1 }
 0x157   :  { %v2014_v45 = vpop.permute.xlu2 %659  ;;  %v532_v46 = vpop.permute.xlu0 %531 }
 0x158   :  { %v530_v40 = vpop.permute.xlu1 %529 }
 0x159   :  { %v975_v60 = vsel %vm971_vm3, %v958_v41, %v530_v40  ;;  %v2094_v41 = vld [vmem:[#allocation2 + $0x112] sm:$0xff] }
 0x15a   :  { %v992_v2 = vsel %vm988_vm5, %v975_v60, %v594_v12 }
 0x15b   :  { %v1008_v11 = vsel %vm69_vm0, %v992_v2, %v658_v34 }
 0x15d   :  { %605 = vrot.lane.b32.xlu2 %v2004_v38, %s1604_s3  ;;  %483 = vrot.lane.b32.xlu0 %v2018_v48, %s1599_s0 }
 0x15e   :  { %669 = vrot.lane.b32.xlu1 %v1991_v52, %s1605_s30 }
 0x15f   :  { %v2029_v50 = vpop.permute.xlu2 %533  ;;  %v850_v54 = vpop.permute.xlu0 %849 }
 0x160   :  { %v848_v49 = vpop.permute.xlu1 %847 }
 0x161   :  { %v1058_v51 = vsel %vm1055_vm8, %v1041_v42, %v848_v49 }
 0x162   :  { %v1075_v58 = vsel %vm1072_vm9, %v1058_v51, %v912_v57 }
 0x163   :  { %1497 = vmatmul.msk.f32.gmra.mxu1 %vm1094_vm10, %v1075_v58 }
 0x165   :  { %797 = vrot.lane.b32.xlu2 %v2041_v8, %s1600_s1  ;;  %675 = vrot.lane.b32.xlu0 %v2037_v3, %s1605_s30 }
 0x166   :  { %861 = vrot.lane.b32.xlu1 %v2039_v4, %s1601_s24 }
 0x167   :  { %v852_v57 = vpop.permute.xlu2 %851  ;;  %v724_v13 = vpop.permute.xlu0 %723 }
 0x168   :  { %v722_v1 = vpop.permute.xlu1 %721 }
 0x169   :  { %v1025_v14 = vsel %vm1021_vm6, %v1008_v11, %v722_v1 }
 0x16a   :  { %v1042_v12 = vsel %vm1038_vm7, %v1025_v14, %v786_v32  ;;  %v222_v32 = vadd.f32 %v1736_v21, %v202_v25  ;;  %v959_v21 = vsel %vm239_vm1, %v1811_v7, %v1984_v19 }
 0x16b   :  { %v1059_v24 = vsel %vm1055_vm8, %v1042_v12, %v850_v54  ;;  %v976_v49 = vsel %vm971_vm3, %v959_v21, %v532_v46 }
 0x16c   :  { %v238_v34 = vmax.f32 %v222_v32, 0.0 }
 0x16d   :  { %547 = vrot.lane.b32.xlu2 %v2057_v18, %s1597_s19  ;;  %549 = vrot.lane.b32.xlu0 %v2054_v16, %s1597_s19 }
 0x16e   :  { %611 = vrot.lane.b32.xlu1 %v2052_v15, %s1604_s3  ;;  %297 = vst.msk [vmem:[#allocation2 + $0x121] sm:$0xff] %vm239_vm1, %v238_v34 }
 0x16f   :  { %v726_v44 = vpop.permute.xlu2 %725  ;;  %v916_v29 = vpop.permute.xlu0 %915 }
 0x170   :  { %v914_v31 = vpop.permute.xlu1 %913 }
 0x171   :  { %v1076_v26 = vsel %vm1072_vm9, %v1059_v24, %v914_v31 }
 0x172   :  { %1498 = vmatmul.msk.f32.gmra.mxu1 %vm1094_vm10, %v1076_v26 }
 0x175   :  { %739 = vrot.lane.b32.xlu2 %v2054_v16, %s1603_s2  ;;  %925 = vrot.lane.b32.xlu0 %v2072_v23, %s1602_s25  ;;  %v409_v36 = vld [vmem:[#allocation2 + $0x120] sm:$0xff] }
 0x176   :  { %485 = vrot.lane.b32.xlu1 %v2037_v3, %s1599_s0 }
 0x177   :  { %v918_v27 = vpop.permute.xlu2 %917  ;;  %v598_v40 = vpop.permute.xlu0 %597 }
 0x178   :  { %v596_v20 = vpop.permute.xlu1 %595 }
 0x179   :  { %v993_v51 = vsel %vm988_vm5, %v976_v49, %v596_v20  ;;  %v425_v20 = vld [vmem:[#allocation2 + $0x121] sm:$0xff] }
 0x17a   :  { %v1009_v54 = vsel %vm69_vm0, %v993_v51, %v2014_v45  ;;  %v2169_v51 = vld [vmem:[%s2454_s6] ss:$0 sm:$0xff] }
 0x17b   :  { %v1026_v7 = vsel %vm1021_vm6, %v1009_v54, %v724_v13 }
 0x17d   :  { %869 = vrot.lane.b32.xlu2 %v2079_v53, %s1601_s24  ;;  %543 = vrot.lane.b32.xlu0 %v2002_v37, %s1597_s19 }
 0x17e   :  { %479 = vrot.lane.b32.xlu1 %v1991_v52, %s1599_s0 }
 0x17f   :  { %v600_v62 = vpop.permute.xlu2 %599  ;;  %v472_v42 = vpop.permute.xlu0 %471 }
 0x180   :  { %v470_v47 = vpop.permute.xlu1 %469  ;;  %v961_v32 = vsel %vm239_vm1, %v1867_v39, %v472_v42  ;;  %v441_v42 = vld [vmem:[#allocation2 + $0x122] sm:$0xff] }
 0x181   :  { %v960_v1 = vsel %vm239_vm1, %v1845_v28, %v470_v47 }
 0x185   :  { %487 = vrot.lane.b32.xlu2 %v1776_v56, %s1599_s0  ;;  %607 = vrot.lane.b32.xlu0 %v2041_v8, %s1604_s3 }
 0x186   :  { %933 = vrot.lane.b32.xlu1 %v2094_v41, %s1602_s25 }
 0x187   :  { %v2103_v52 = vpop.permute.xlu2 %473  ;;  %v790_v46 = vpop.permute.xlu0 %789 }
 0x188   :  { %v788_v19 = vpop.permute.xlu1 %787 }
 0x189   :  { %v1043_v37 = vsel %vm1038_vm7, %v1026_v7, %v788_v19 }
 0x18a   :  { %v1060_v45 = vsel %vm1055_vm8, %v1043_v37, %v852_v57  ;;  %v1268_v57 = vld [vmem:[%s2455_s7] sm:$0xf] }
 0x18b   :  { %v1077_v58 = vsel %vm1072_vm9, %v1060_v45, %v916_v29  ;;  %1511 = vmatpush.msk.msra.mxu2 %vm1143_vm4, %v1268_v57  ;;  %1535 = vmatpush.msk.msra.mxu3 %vm1143_vm4, %v1268_v57 }
 0x18c   :  { %1499 = vmatmul.msk.f32.gmra.mxu1 %vm1094_vm10, %v1077_v58 }
 0x18d   :  { %671 = vrot.lane.b32.xlu2 %v2039_v4, %s1605_s30  ;;  %615 = vrot.lane.b32.xlu0 %v1795_v0, %s1604_s3  ;;  %v2126_v0 = vld [vmem:[#allocation2 + $0xe0] sm:$0xff] }
 0x18e   :  { %551 = vrot.lane.b32.xlu1 %v1758_v43, %s1597_s19  ;;  %v977_v43 = vsel %vm971_vm3, %v960_v1, %v2029_v50 }
 0x18f   :  { %v792_v60 = vpop.permute.xlu2 %791  ;;  %v664_v2 = vpop.permute.xlu0 %663  ;;  %v994_v13 = vsel %vm988_vm5, %v977_v43, %v598_v40 }
 0x190   :  { %v662_v56 = vpop.permute.xlu1 %661 }
 0x191   :  { %v1010_v12 = vsel %vm69_vm0, %v994_v13, %v662_v56 }
 0x192   :  { %v1027_v50 = vsel %vm1021_vm6, %v1010_v12, %v726_v44 }
 0x193   :  { %v1044_v24 = vsel %vm1038_vm7, %v1027_v50, %v790_v46 }
 0x195   :  { %679 = vrot.lane.b32.xlu2 %v2079_v53, %s1605_s30  ;;  %799 = vrot.lane.b32.xlu0 %v2126_v0, %s1600_s1 }
 0x196   :  { %735 = vrot.lane.b32.xlu1 %v2072_v23, %s1603_s2 }
 0x197   :  { %v666_v11 = vpop.permute.xlu2 %665  ;;  %v538_v14 = vpop.permute.xlu0 %537 }
 0x198   :  { %v536_v28 = vpop.permute.xlu1 %535 }
 0x199   :  { %v978_v34 = vsel %vm971_vm3, %v961_v32, %v536_v28  ;;  %v426_v32 = vld [vmem:[#allocation2 + $0x131] sm:$0xff] }
 0x19a   :  { %v995_v40 = vsel %vm988_vm5, %v978_v34, %v600_v62  ;;  %v2160_v62 = vld [vmem:[%s2453_s5] ss:$0 sm:$0xff] }
 0x19b   :  { %v1011_v39 = vsel %vm69_vm0, %v995_v40, %v664_v2  ;;  %v442_v40 = vld [vmem:[#allocation2 + $0x132] sm:$0xff] }
 0x19d   :  { %863 = vrot.lane.b32.xlu2 %v2018_v48, %s1601_s24  ;;  %807 = vrot.lane.b32.xlu0 %v409_v36, %s1600_s1 }
 0x19e   :  { %743 = vrot.lane.b32.xlu1 %v2094_v41, %s1603_s2 }
 0x19f   :  { %v732_v25 = vpop.permute.xlu2 %731  ;;  %v856_v26 = vpop.permute.xlu0 %855 }
 0x1a0   :  { %v854_v31 = vpop.permute.xlu1 %853 }
 0x1a1   :  { %v1061_v29 = vsel %vm1055_vm8, %v1044_v24, %v854_v31 }
 0x1a2   :  { %v1078_v44 = vsel %vm1072_vm9, %v1061_v29, %v918_v27 }
 0x1a3   :  { %1500 = vmatmul.msk.f32.gmra.mxu1 %vm1094_vm10, %v1078_v44 }
 0x1a5   :  { %481 = vrot.lane.b32.xlu2 %v2039_v4, %s1599_s0  ;;  %871 = vrot.lane.b32.xlu0 %v425_v20, %s1601_s24 }
 0x1a6   :  { %927 = vrot.lane.b32.xlu1 %v2057_v18, %s1602_s25 }
 0x1a7   :  { %v2153_v47 = vpop.permute.xlu2 %541  ;;  %v730_v27 = vpop.permute.xlu0 %729 }
 0x1a8   :  { %v728_v21 = vpop.permute.xlu1 %727 }
 0x1a9   :  { %v1028_v49 = vsel %vm1021_vm6, %v1011_v39, %v728_v21 }
 0x1aa   :  { %v1045_v4 = vsel %vm1038_vm7, %v1028_v49, %v792_v60 }
 0x1ab   :  { %v1062_v46 = vsel %vm1055_vm8, %v1045_v4, %v856_v26 }
 0x1ad   :  { %935 = vrot.lane.b32.xlu2 %v441_v42, %s1602_s25  ;;  %489 = vrot.lane.b32.xlu0 %v2079_v53, %s1599_s0  ;;  %v962_v53 = vsel %vm239_vm1, %v1905_v59, %v2103_v52 }
 0x1ae   :  { %545 = vrot.lane.b32.xlu1 %v2072_v23, %s1597_s19  ;;  %v979_v60 = vsel %vm971_vm3, %v962_v53, %v538_v14 }
 0x1af   :  { %v1164_v54 = vpop.f32.mrf.mxu1  ;;  %v924_v37 = vpop.permute.xlu2 %923 }
 0x1b0   :  { %v1216_v7 = vmul.f32 %v2160_v62, %v1164_v54  ;;  %v920_v19 = vpop.permute.xlu1 %919  ;;  %v668_v45 = vpop.permute.xlu0 %667 }
 0x1b1   :  { %v1079_v58 = vsel %vm1072_vm9, %v1062_v46, %v920_v19 }
 0x1b2   :  { %v1236_v23 = vadd.f32 %v2169_v51, %v1216_v7  ;;  %1501 = vmatmul.msk.f32.gmra.mxu1 %vm1094_vm10, %v1079_v58 }
 0x1b4   :  { %v1252_v56 = vmax.f32 %v1236_v23, 0.0 }
 0x1b5   :  { %553 = vrot.lane.b32.xlu2 %v2094_v41, %s1597_s19  ;;  %673 = vrot.lane.b32.xlu0 %v2018_v48, %s1605_s30 }
 0x1b6   :  { %1512 = vmatmul.msk.f32.vlgmr.msra.gmra.mxu2 %vm239_vm1, %v1252_v56  ;;  %609 = vrot.lane.b32.xlu1 %v2126_v0, %s1604_s3 }
 0x1b7   :  { %v606_v1 = vpop.permute.xlu2 %605 }
 0x1b8   :  { %v602_v2 = vpop.permute.xlu1 %601  ;;  %v478_v43 = vpop.permute.xlu0 %477 }
 0x1b9   :  { %v996_v57 = vsel %vm988_vm5, %v979_v60, %v602_v2  ;;  %v964_v49 = vsel %vm239_vm1, %v1993_v30, %v478_v43 }
 0x1ba   :  { %v1012_v28 = vsel %vm69_vm0, %v996_v57, %v666_v11 }
 0x1bb   :  { %v1029_v41 = vsel %vm1021_vm6, %v1012_v28, %v730_v27 }
 0x1bc   :  { %v1046_v59 = vsel %vm1038_vm7, %v1029_v41, %v1819_v9 }
 0x1bd   :  { %v1063_v48 = vsel %vm1055_vm8, %v1046_v59, %v1821_v10  ;;  %737 = vrot.lane.b32.xlu2 %v2057_v18, %s1603_s2  ;;  %681 = vrot.lane.b32.xlu0 %v425_v20, %s1605_s30 }
 0x1be   :  { %v1080_v52 = vsel %vm1072_vm9, %v1063_v48, %v1861_v33  ;;  %617 = vrot.lane.b32.xlu1 %v409_v36, %s1604_s3 }
 0x1bf   :  { %1502 = vmatmul.msk.f32.gmra.mxu1 %vm1094_vm10, %v1080_v52  ;;  %v798_v13 = vpop.permute.xlu2 %797 }
 0x1c0   :  { %v604_v11 = vpop.permute.xlu1 %603  ;;  %v860_v14 = vpop.permute.xlu0 %859 }
 0x1c1   :  { %v997_v9 = vsel %vm988_vm5, %v1828_v17, %v604_v11 }
 0x1c2   :  { %v1013_v10 = vsel %vm69_vm0, %v997_v9, %v668_v45 }
 0x1c3   :  { %v1030_v33 = vsel %vm1021_vm6, %v1013_v10, %v732_v25 }
 0x1c5   :  { %745 = vrot.lane.b32.xlu2 %v441_v42, %s1603_s2  ;;  %865 = vrot.lane.b32.xlu0 %v2037_v3, %s1601_s24  ;;  %v410_v3 = vld [vmem:[#allocation2 + $0x130] sm:$0xff] }
 0x1c6   :  { %801 = vrot.lane.b32.xlu1 %v2052_v15, %s1600_s1 }
 0x1c7   :  { %v548_v12 = vpop.permute.xlu2 %547 }
 0x1c8   :  { %v796_v18 = vpop.permute.xlu1 %795  ;;  %v734_v50 = vpop.permute.xlu0 %733 }
 0x1c9   :  { %v1047_v36 = vsel %vm1038_vm7, %v1030_v33, %v796_v18  ;;  %v1167_v31 = vpop.f32.mrf.mxu1 }
 0x1ca   :  { %v1217_v17 = vmul.f32 %v2160_v62, %v1167_v31  ;;  %v1064_v24 = vsel %vm1055_vm8, %v1047_v36, %v860_v14 }
 0x1cb   :  { %v1081_v29 = vsel %vm1072_vm9, %v1064_v24, %v924_v37 }
 0x1cc   :  { %v1237_v26 = vadd.f32 %v2169_v51, %v1217_v17  ;;  %1503 = vmatmul.msk.f32.gmra.mxu1 %vm1094_vm10, %v1081_v29 }
 0x1cd   :  { %929 = vrot.lane.b32.xlu2 %v2054_v16, %s1602_s25  ;;  %873 = vrot.lane.b32.xlu0 %v426_v32, %s1601_s24  ;;  %v981_v16 = vsel %vm971_vm3, %v964_v49, %v2153_v47 }
 0x1ce   :  { %v1253_v44 = vmax.f32 %v1237_v26, 0.0  ;;  %809 = vrot.lane.b32.xlu1 %v410_v3, %s1600_s1  ;;  %v998_v7 = vsel %vm988_vm5, %v981_v16, %v606_v1 }
 0x1cf   :  { %v740_v34 = vpop.permute.xlu2 %739 }
 0x1d0   :  { %1513 = vmatmul.msk.f32.gmra.mxu2 %vm239_vm1, %v1253_v44  ;;  %v670_v25 = vpop.permute.xlu1 %669  ;;  %v484_v20 = vpop.permute.xlu0 %483  ;;  %v312_v44 = vld [vmem:[#allocation2 + $0x100] sm:$0xff] }
 0x1d1   :  { %v967_v4 = vsel %vm239_vm1, %v2126_v0, %v484_v20  ;;  %v1014_v58 = vsel %vm69_vm0, %v998_v7, %v670_v25 }
 0x1d2   :  { %v984_v37 = vsel %vm971_vm3, %v967_v4, %v548_v12  ;;  %v1031_v56 = vsel %vm1021_vm6, %v1014_v58, %v734_v50 }
 0x1d3   :  { %v1048_v57 = vsel %vm1038_vm7, %v1031_v56, %v798_v13 }
 0x1d6   :  { %937 = vrot.lane.b32.xlu1 %v442_v40, %s1602_s25 }
 0x1d7   :  { %v870_v39 = vpop.permute.xlu2 %869 }
 0x1d8   :  { %v862_v21 = vpop.permute.xlu1 %861  ;;  %v676_v27 = vpop.permute.xlu0 %675 }
 0x1d9   :  { %v1065_v43 = vsel %vm1055_vm8, %v1048_v57, %v862_v21 }
 0x1df   :  { %v488_v54 = vpop.permute.xlu2 %487 }
 0x1e0   :  { %v1170_v42 = vpop.f32.mrf.mxu1  ;;  %v612_v46 = vpop.permute.xlu1 %611 }
 0x1e1   :  { %v1218_v19 = vmul.f32 %v2160_v62, %v1170_v42  ;;  %v550_v45 = vpop.permute.xlu0 %549  ;;  %v1001_v30 = vsel %vm988_vm5, %v984_v37, %v612_v46 }
 0x1e2   :  { %v1017_v47 = vsel %vm69_vm0, %v1001_v30, %v676_v27 }
 0x1e3   :  { %v1238_v23 = vadd.f32 %v2169_v51, %v1218_v19  ;;  %v1034_v0 = vsel %vm1021_vm6, %v1017_v47, %v740_v34  ;;  %v969_v34 = vsel %vm239_vm1, %v312_v44, %v488_v54  ;;  %v1553_v44 = vld [vmem:[#allocation3] sm:$0xff] }
 0x1e4   :  { %v1051_v60 = vsel %vm1038_vm7, %v1034_v0, %v1914_v61 }
 0x1e5   :  { %v1254_v53 = vmax.f32 %v1238_v23, 0.0  ;;  %v1068_v2 = vsel %vm1055_vm8, %v1051_v60, %v1923_v5 }
 0x1e6   :  { %v1085_v1 = vsel %vm1072_vm9, %v1068_v2, %v1899_v55 }
 0x1e7   :  { %1514 = vmatmul.msk.f32.gmra.mxu2 %vm239_vm1, %v1254_v53  ;;  %1507 = vmatmul.msk.f32.vlgmr.msrb.gmra.mxu3 %vm1094_vm10, %v1085_v1  ;;  %v672_v59 = vpop.permute.xlu2 %671 }
 0x1e8   :  { %v486_v41 = vpop.permute.xlu1 %485 }
 0x1e9   :  { %v926_v28 = vpop.permute.xlu0 %925  ;;  %v968_v61 = vsel %vm239_vm1, %v2052_v15, %v486_v41 }
 0x1ea   :  { %v1082_v48 = vsel %vm1072_vm9, %v1065_v43, %v926_v28  ;;  %v985_v5 = vsel %vm971_vm3, %v968_v61, %v550_v45 }
 0x1eb   :  { %1504 = vmatmul.msk.f32.gmra.mxu1 %vm1094_vm10, %v1082_v48  ;;  %v1002_v55 = vsel %vm988_vm5, %v985_v5, %v1863_v35 }
 0x1ec   :  { %v1018_v11 = vsel %vm69_vm0, %v1002_v55, %v1940_v22 }
 0x1ed   :  { %v1035_v15 = vsel %vm1021_vm6, %v1018_v11, %v1918_v63 }
 0x1ee   :  { %v1052_v35 = vsel %vm1038_vm7, %v1035_v15, %v1925_v6  ;;  %v2304_v15 = vld [vmem:[%s2456_s8] ss:$0 sm:$0xff] }
 0x1ef   :  { %v1173_v52 = vpop.f32.mrf.mxu1  ;;  %v680_v18 = vpop.permute.xlu2 %679  ;;  %v1069_v22 = vsel %vm1055_vm8, %v1052_v35, %v870_v39  ;;  %v2310_v35 = vld [vmem:[%s2457_s9] ss:$0 sm:$0xff] }
 0x1f0   :  { %v1219_v13 = vmul.f32 %v2160_v62, %v1173_v52  ;;  %v480_v9 = vpop.permute.xlu1 %479 }
 0x1f1   :  { %v544_v14 = vpop.permute.xlu0 %543  ;;  %v965_v32 = vsel %vm239_vm1, %v2004_v38, %v480_v9 }
 0x1f2   :  { %v1239_v10 = vadd.f32 %v2169_v51, %v1219_v13  ;;  %v982_v20 = vsel %vm971_vm3, %v965_v32, %v544_v14 }
 0x1f4   :  { %v1255_v33 = vmax.f32 %v1239_v10, 0.0 }
 0x1f6   :  { %1515 = vmatmul.msk.f32.gmra.mxu2 %vm239_vm1, %v1255_v33 }
 0x1f7   :  { %v864_v31 = vpop.permute.xlu2 %863 }
 0x1f8   :  { %v934_v36 = vpop.permute.xlu1 %933 }
 0x1f9   :  { %v608_v12 = vpop.permute.xlu0 %607  ;;  %v1086_v50 = vsel %vm1072_vm9, %v1069_v22, %v934_v36 }
 0x1fa   :  { %1508 = vmatmul.msk.f32.gmra.mxu3 %vm1094_vm10, %v1086_v50  ;;  %v999_v40 = vsel %vm988_vm5, %v982_v20, %v608_v12  ;;  %v313_v12 = vld [vmem:[#allocation2 + $0x110] sm:$0xff] }
 0x1fb   :  { %v1015_v4 = vsel %vm69_vm0, %v999_v40, %v672_v59 }
 0x1ff   :  { %v482_v29 = vpop.permute.xlu2 %481 }
 0x200   :  { %v552_v24 = vpop.permute.xlu1 %551  ;;  %v966_v5 = vsel %vm239_vm1, %v2041_v8, %v482_v29 }
 0x201   :  { %v616_v17 = vpop.permute.xlu0 %615  ;;  %v986_v21 = vsel %vm971_vm3, %v969_v34, %v552_v24 }
 0x202   :  { %v1003_v38 = vsel %vm988_vm5, %v986_v21, %v616_v17 }
 0x203   :  { %v1019_v54 = vsel %vm69_vm0, %v1003_v38, %v680_v18 }
 0x207   :  { %v936_v16 = vpop.permute.xlu2 %935 }
 0x208   :  { %v736_v26 = vpop.permute.xlu1 %735 }
 0x209   :  { %v800_v63 = vpop.permute.xlu0 %799  ;;  %v1176_v3 = vpop.f32.mrf.mxu1  ;;  %v1032_v42 = vsel %vm1021_vm6, %v1015_v4, %v736_v26 }
 0x20a   :  { %v1220_v6 = vmul.f32 %v2160_v62, %v1176_v3  ;;  %v1049_v7 = vsel %vm1038_vm7, %v1032_v42, %v800_v63 }
 0x20b   :  { %v1066_v58 = vsel %vm1055_vm8, %v1049_v7, %v864_v31 }
 0x20c   :  { %v1240_v25 = vadd.f32 %v2169_v51, %v1220_v6 }
 0x20e   :  { %v1256_v39 = vmax.f32 %v1240_v25, 0.0 }
 0x20f   :  { %v554_v0 = vpop.permute.xlu2 %553 }
 0x210   :  { %1516 = vmatmul.msk.f32.gmra.mxu2 %vm239_vm1, %v1256_v39  ;;  %v744_v49 = vpop.permute.xlu1 %743 }
 0x211   :  { %v808_v27 = vpop.permute.xlu0 %807  ;;  %v1036_v19 = vsel %vm1021_vm6, %v1019_v54, %v744_v49 }
 0x212   :  { %v1053_v46 = vsel %vm1038_vm7, %v1036_v19, %v808_v27 }
 0x217   :  { %v738_v43 = vpop.permute.xlu2 %737 }
 0x218   :  { %v928_v45 = vpop.permute.xlu1 %927 }
 0x219   :  { %v872_v37 = vpop.permute.xlu0 %871  ;;  %v1083_v23 = vsel %vm1072_vm9, %v1066_v58, %v928_v45 }
 0x21a   :  { %v1070_v30 = vsel %vm1055_vm8, %v1053_v46, %v872_v37  ;;  %1505 = vmatmul.msk.f32.gmra.mxu1 %vm1094_vm10, %v1083_v23 }
 0x21b   :  { %v1087_v47 = vsel %vm1072_vm9, %v1070_v30, %v936_v16  ;;  %v1554_v30 = vld [vmem:[#allocation3 + $0x8] sm:$0xff] }
 0x21c   :  { %1509 = vmatmul.msk.f32.gmra.mxu3 %vm1094_vm10, %v1087_v47 }
 0x21f   :  { %v746_v61 = vpop.permute.xlu2 %745 }
 0x220   :  { %v1179_v56 = vpop.f32.mrf.mxu1  ;;  %v546_v2 = vpop.permute.xlu1 %545 }
 0x221   :  { %v1221_v53 = vmul.f32 %v2160_v62, %v1179_v56  ;;  %v490_v60 = vpop.permute.xlu0 %489  ;;  %v983_v11 = vsel %vm971_vm3, %v966_v5, %v546_v2 }
 0x222   :  { %v970_v50 = vsel %vm239_vm1, %v313_v12, %v490_v60 }
 0x223   :  { %v1241_v1 = vadd.f32 %v2169_v51, %v1221_v53  ;;  %v987_v3 = vsel %vm971_vm3, %v970_v50, %v554_v0 }
 0x225   :  { %v1257_v57 = vmax.f32 %v1241_v1, 0.0 }
 0x227   :  { %1517 = vmatmul.msk.f32.gmra.mxu2 %vm239_vm1, %v1257_v57  ;;  %v930_v31 = vpop.permute.xlu2 %929 }
 0x228   :  { %v610_v41 = vpop.permute.xlu1 %609 }
 0x229   :  { %v674_v28 = vpop.permute.xlu0 %673  ;;  %v1000_v14 = vsel %vm988_vm5, %v983_v11, %v610_v41 }
 0x22a   :  { %v1016_v10 = vsel %vm69_vm0, %v1000_v14, %v674_v28 }
 0x22b   :  { %v1033_v8 = vsel %vm1021_vm6, %v1016_v10, %v738_v43  ;;  %v1555_v43 = vld [vmem:[#allocation3 + $0x10] sm:$0xff] }
 0x22f   :  { %v1182_v59 = vpop.f32.mrf.mxu1 }
 0x230   :  { %v1222_v48 = vmul.f32 %v2160_v62, %v1182_v59  ;;  %v618_v52 = vpop.permute.xlu1 %617 }
 0x231   :  { %v682_v55 = vpop.permute.xlu0 %681  ;;  %v1004_v6 = vsel %vm988_vm5, %v987_v3, %v618_v52 }
 0x232   :  { %v1242_v13 = vadd.f32 %v2169_v51, %v1222_v48  ;;  %v1020_v21 = vsel %vm69_vm0, %v1004_v6, %v682_v55  ;;  %v1556_v55 = vld [vmem:[#allocation3 + $0x18] sm:$0xff] }
 0x233   :  { %v1037_v27 = vsel %vm1021_vm6, %v1020_v21, %v746_v61 }
 0x234   :  { %v1258_v9 = vmax.f32 %v1242_v13, 0.0 }
 0x236   :  { %1518 = vmatmul.msk.f32.gmra.mxu2 %vm239_vm1, %v1258_v9 }
 0x238   :  { %v802_v18 = vpop.permute.xlu1 %801 }
 0x239   :  { %v866_v33 = vpop.permute.xlu0 %865  ;;  %v1050_v36 = vsel %vm1038_vm7, %v1033_v8, %v802_v18  ;;  %v1337_v22 = vpop.f32.mrf.mxu2 }
 0x23a   :  { %v1389_v17 = vmul.f32 %v2304_v15, %v1337_v22  ;;  %v1067_v24 = vsel %vm1055_vm8, %v1050_v36, %v866_v33  ;;  %v1557_v36 = vld [vmem:[#allocation3 + $0x20] sm:$0xff] }
 0x23b   :  { %v1084_v29 = vsel %vm1072_vm9, %v1067_v24, %v930_v31 }
 0x23c   :  { %v1409_v63 = vadd.f32 %v2310_v35, %v1389_v17  ;;  %v1185_v26 = vpop.f32.mrf.mxu1  ;;  %1506 = vmatmul.msk.f32.gmra.mxu1 %vm1094_vm10, %v1084_v29 }
 0x23d   :  { %v1223_v32 = vmul.f32 %v2160_v62, %v1185_v26 }
 0x23e   :  { %v1425_v25 = vadd.f32 %v1553_v44, %v1409_v63 }
 0x23f   :  { %v1243_v34 = vadd.f32 %v2169_v51, %v1223_v32 }
 0x240   :  { %v1441_v20 = vmax.f32 %v1425_v25, 0.0  ;;  %v810_v40 = vpop.permute.xlu1 %809  ;;  %v1558_v25 = vld [vmem:[#allocation3 + $0x28] sm:$0xff] }
 0x241   :  { %v1259_v39 = vmax.f32 %v1243_v34, 0.0  ;;  %v1054_v49 = vsel %vm1038_vm7, %v1037_v27, %v810_v40  ;;  %v874_v38 = vpop.permute.xlu0 %873 }
 0x242   :  { %1457 = vst.msk [vmem:[%s2458_s10] sm:$0xff] %vm69_vm0, %v1441_v20  ;;  %v1071_v16 = vsel %vm1055_vm8, %v1054_v49, %v874_v38 }
 0x243   :  { %1519 = vmatmul.msk.f32.gmra.mxu2 %vm239_vm1, %v1259_v39 }
 0x248   :  { %v938_v4 = vpop.permute.xlu1 %937 }
 0x249   :  { %v1188_v42 = vpop.f32.mrf.mxu1  ;;  %v1088_v7 = vsel %vm1072_vm9, %v1071_v16, %v938_v4  ;;  %v1559_v16 = vld [vmem:[#allocation3 + $0x30] sm:$0xff] }
 0x24a   :  { %v1224_v54 = vmul.f32 %v2160_v62, %v1188_v42  ;;  %1510 = vmatmul.msk.f32.gmra.mxu3 %vm1094_vm10, %v1088_v7 }
 0x24c   :  { %v1244_v19 = vadd.f32 %v2169_v51, %v1224_v54 }
 0x24e   :  { %v1260_v37 = vmax.f32 %v1244_v19, 0.0 }
 0x250   :  { %1520 = vmatmul.msk.f32.gmra.mxu2 %vm239_vm1, %v1260_v37 }
 0x253   :  { %v1340_v46 = vpop.f32.mrf.mxu2 }
 0x254   :  { %v1390_v45 = vmul.f32 %v2304_v15, %v1340_v46 }
 0x256   :  { %v1410_v58 = vadd.f32 %v2310_v35, %v1390_v45 }
 0x258   :  { %v1426_v23 = vadd.f32 %v1554_v30, %v1410_v58  ;;  %v1560_v30 = vld [vmem:[#allocation3 + $0x38] sm:$0xff] }
 0x25a   :  { %v1442_v47 = vmax.f32 %v1426_v23, 0.0 }
 0x25c   :  { %1458 = vst.msk [vmem:[%s2458_s10 + $0x8] sm:$0xff] %vm69_vm0, %v1442_v47 }
 0x268   :  { %v1191_v0 = vpop.f32.mrf.mxu1 }
 0x269   :  { %v1225_v56 = vmul.f32 %v2160_v62, %v1191_v0 }
 0x26a   :  { %v1343_v53 = vpop.f32.mrf.mxu2  ;;  %v1200_v59 = vpop.f32.mrf.mxu3 }
 0x26b   :  { %v1245_v60 = vadd.f32 %v2169_v51, %v1225_v56  ;;  %v1391_v2 = vmul.f32 %v2304_v15, %v1343_v53  ;;  %v1228_v42 = vmul.f32 %v2160_v62, %v1200_v59 }
 0x26d   :  { %v1261_v1 = vmax.f32 %v1245_v60, 0.0  ;;  %v1411_v57 = vadd.f32 %v2310_v35, %v1391_v2  ;;  %v1248_v19 = vadd.f32 %v2169_v51, %v1228_v42 }
 0x26f   :  { %v1427_v28 = vadd.f32 %v1555_v43, %v1411_v57  ;;  %1521 = vmatmul.msk.f32.gmra.mxu2 %vm239_vm1, %v1261_v1  ;;  %v1264_v37 = vmax.f32 %v1248_v19, 0.0  ;;  %v1561_v43 = vld [vmem:[#allocation3 + $0x40] sm:$0xff] }
 0x271   :  { %v1443_v41 = vmax.f32 %v1427_v28, 0.0 }
 0x273   :  { %1459 = vst.msk [vmem:[%s2458_s10 + $0x10] sm:$0xff] %vm69_vm0, %v1443_v41 }
 0x279   :  { %v1346_v61 = vpop.f32.mrf.mxu2 }
 0x27a   :  { %v1392_v48 = vmul.f32 %v2304_v15, %v1346_v61  ;;  %v1562_v61 = vld [vmem:[#allocation3 + $0x48] sm:$0xff] }
 0x27c   :  { %v1412_v5 = vadd.f32 %v2310_v35, %v1392_v48 }
 0x27d   :  { %v1203_v11 = vpop.f32.mrf.mxu3 }
 0x27e   :  { %v1428_v52 = vadd.f32 %v1556_v55, %v1412_v5  ;;  %v1229_v13 = vmul.f32 %v2160_v62, %v1203_v11 }
 0x280   :  { %v1444_v14 = vmax.f32 %v1428_v52, 0.0  ;;  %v1249_v9 = vadd.f32 %v2169_v51, %v1229_v13  ;;  %v1563_v13 = vld [vmem:[#allocation3 + $0x68] sm:$0xff] }
 0x282   :  { %1460 = vst.msk [vmem:[%s2458_s10 + $0x18] sm:$0xff] %vm69_vm0, %v1444_v14  ;;  %v1265_v10 = vmax.f32 %v1249_v9, 0.0 }
 0x284   :  { %1525 = vmatmul.msk.f32.vlgmr.msra.gmra.mxu3 %vm239_vm1, %v1265_v10 }
 0x293   :  { %v1349_v33 = vpop.f32.mrf.mxu2 }
 0x294   :  { %v1393_v8 = vmul.f32 %v2304_v15, %v1349_v33 }
 0x296   :  { %v1413_v18 = vadd.f32 %v2310_v35, %v1393_v8 }
 0x297   :  { %v1194_v12 = vpop.f32.mrf.mxu1 }
 0x298   :  { %v1429_v22 = vadd.f32 %v1557_v36, %v1413_v18  ;;  %v1226_v50 = vmul.f32 %v2160_v62, %v1194_v12  ;;  %v1564_v18 = vld [vmem:[#allocation3 + $0x50] sm:$0xff] }
 0x29a   :  { %v1445_v31 = vmax.f32 %v1429_v22, 0.0  ;;  %v1246_v17 = vadd.f32 %v2169_v51, %v1226_v50 }
 0x29c   :  { %1461 = vst.msk [vmem:[%s2458_s10 + $0x20] sm:$0xff] %vm69_vm0, %v1445_v31  ;;  %v1262_v24 = vmax.f32 %v1246_v17, 0.0  ;;  %v1565_v17 = vld [vmem:[#allocation3 + $0x70] sm:$0xff] }
 0x29e   :  { %1522 = vmatmul.msk.f32.gmra.mxu2 %vm239_vm1, %v1262_v24 }
 0x29f   :  { %v1206_v29 = vpop.f32.mrf.mxu3 }
 0x2a0   :  { %v1230_v63 = vmul.f32 %v2160_v62, %v1206_v29 }
 0x2a2   :  { %v1250_v26 = vadd.f32 %v2169_v51, %v1230_v63 }
 0x2a4   :  { %v1266_v3 = vmax.f32 %v1250_v26, 0.0 }
 0x2a6   :  { %1526 = vmatmul.msk.f32.gmra.mxu3 %vm239_vm1, %v1266_v3 }
 0x2aa   :  { %v1352_v32 = vpop.f32.mrf.mxu2 }
 0x2ab   :  { %v1394_v6 = vmul.f32 %v2304_v15, %v1352_v32  ;;  %v1566_v32 = vld [vmem:[#allocation3 + $0x58] sm:$0xff] }
 0x2ad   :  { %v1414_v44 = vadd.f32 %v2310_v35, %v1394_v6 }
 0x2af   :  { %v1430_v34 = vadd.f32 %v1558_v25, %v1414_v44 }
 0x2b1   :  { %v1446_v20 = vmax.f32 %v1430_v34, 0.0 }
 0x2b3   :  { %1462 = vst.msk [vmem:[%s2458_s10 + $0x28] sm:$0xff] %vm69_vm0, %v1446_v20 }
 0x2b9   :  { %v1355_v40 = vpop.f32.mrf.mxu2  ;;  %v1197_v21 = vpop.f32.mrf.mxu1 }
 0x2ba   :  { %v1395_v39 = vmul.f32 %v2304_v15, %v1355_v40  ;;  %v1227_v27 = vmul.f32 %v2160_v62, %v1197_v21  ;;  %v1567_v40 = vld [vmem:[#allocation3 + $0x60] sm:$0xff] }
 0x2bc   :  { %v1415_v49 = vadd.f32 %v2310_v35, %v1395_v39  ;;  %v1247_v38 = vadd.f32 %v2169_v51, %v1227_v27 }
 0x2be   :  { %v1431_v4 = vadd.f32 %v1559_v16, %v1415_v49  ;;  %v1263_v54 = vmax.f32 %v1247_v38, 0.0  ;;  %v1568_v16 = vld [vmem:[#allocation3 + $0x78] sm:$0xff] }
 0x2c0   :  { %v1447_v7 = vmax.f32 %v1431_v4, 0.0  ;;  %1523 = vmatmul.msk.f32.gmra.mxu2 %vm239_vm1, %v1263_v54 }
 0x2c2   :  { %1463 = vst.msk [vmem:[%s2458_s10 + $0x30] sm:$0xff] %vm69_vm0, %v1447_v7 }
 0x2c6   :  { %v1358_v46 = vpop.f32.mrf.mxu2 }
 0x2c7   :  { %v1396_v45 = vmul.f32 %v2304_v15, %v1358_v46 }
 0x2c8   :  { %1524 = vmatmul.msk.f32.gmra.mxu2 %vm239_vm1, %v1264_v37 }
 0x2c9   :  { %v1416_v58 = vadd.f32 %v2310_v35, %v1396_v45 }
 0x2cb   :  { %v1432_v23 = vadd.f32 %v1560_v30, %v1416_v58 }
 0x2cd   :  { %v1448_v47 = vmax.f32 %v1432_v23, 0.0  ;;  %v1209_v0 = vpop.f32.mrf.mxu3 }
 0x2ce   :  { %v1231_v56 = vmul.f32 %v2160_v62, %v1209_v0 }
 0x2cf   :  { %1464 = vst.msk [vmem:[%s2458_s10 + $0x38] sm:$0xff] %vm69_vm0, %v1448_v47 }
 0x2d0   :  { %v1251_v53 = vadd.f32 %v2169_v51, %v1231_v56 }
 0x2d2   :  { %v1267_v60 = vmax.f32 %v1251_v53, 0.0 }
 0x2d3   :  { %v1361_v2 = vpop.f32.mrf.mxu2 }
 0x2d4   :  { %v1397_v1 = vmul.f32 %v2304_v15, %v1361_v2  ;;  %1527 = vmatmul.msk.f32.gmra.mxu3 %vm239_vm1, %v1267_v60 }
 0x2d6   :  { %v1417_v57 = vadd.f32 %v2310_v35, %v1397_v1 }
 0x2d8   :  { %v1433_v28 = vadd.f32 %v1561_v43, %v1417_v57 }
 0x2da   :  { %v1449_v41 = vmax.f32 %v1433_v28, 0.0 }
 0x2dc   :  { %1465 = vst.msk [vmem:[%s2458_s10 + $0x40] sm:$0xff] %vm69_vm0, %v1449_v41 }
 0x2f2   :  { %v1364_v62 = vpop.f32.mrf.mxu2 }
 0x2f3   :  { %v1398_v59 = vmul.f32 %v2304_v15, %v1364_v62 }
 0x2f5   :  { %v1418_v51 = vadd.f32 %v2310_v35, %v1398_v59 }
 0x2f7   :  { %v1434_v48 = vadd.f32 %v1562_v61, %v1418_v51 }
 0x2f9   :  { %v1450_v5 = vmax.f32 %v1434_v48, 0.0 }
 0x2fb   :  { %1466 = vst.msk [vmem:[%s2458_s10 + $0x48] sm:$0xff] %vm69_vm0, %v1450_v5 }
 0x307   :  { %v1376_v55 = vpop.f32.mrf.mxu3 }
 0x308   :  { %v1402_v52 = vmul.f32 %v2304_v15, %v1376_v55 }
 0x30a   :  { %v1422_v11 = vadd.f32 %v2310_v35, %v1402_v52 }
 0x30c   :  { %v1438_v14 = vadd.f32 %v1563_v13, %v1422_v11 }
 0x30e   :  { %v1454_v9 = vmax.f32 %v1438_v14, 0.0 }
 0x310   :  { %1470 = vst.msk [vmem:[%s2458_s10 + $0x68] sm:$0xff] %vm69_vm0, %v1454_v9 }
 0x321   :  { %v1367_v10 = vpop.f32.mrf.mxu2 }
 0x322   :  { %v1399_v33 = vmul.f32 %v2304_v15, %v1367_v10 }
 0x324   :  { %v1419_v8 = vadd.f32 %v2310_v35, %v1399_v33 }
 0x326   :  { %v1435_v12 = vadd.f32 %v1564_v18, %v1419_v8 }
 0x328   :  { %v1451_v36 = vmax.f32 %v1435_v12, 0.0 }
 0x329   :  { %v1379_v22 = vpop.f32.mrf.mxu3 }
 0x32a   :  { %v1403_v50 = vmul.f32 %v2304_v15, %v1379_v22  ;;  %1467 = vst.msk [vmem:[%s2458_s10 + $0x50] sm:$0xff] %vm69_vm0, %v1451_v36 }
 0x32c   :  { %v1423_v31 = vadd.f32 %v2310_v35, %v1403_v50 }
 0x32e   :  { %v1439_v24 = vadd.f32 %v1565_v17, %v1423_v31 }
 0x330   :  { %v1455_v29 = vmax.f32 %v1439_v24, 0.0 }
 0x332   :  { %1471 = vst.msk [vmem:[%s2458_s10 + $0x70] sm:$0xff] %vm69_vm0, %v1455_v29 }
 0x343   :  { %v1370_v63 = vpop.f32.mrf.mxu2 }
 0x344   :  { %v1400_v26 = vmul.f32 %v2304_v15, %v1370_v63 }
 0x346   :  { %v1420_v3 = vadd.f32 %v2310_v35, %v1400_v26 }
 0x348   :  { %v1436_v6 = vadd.f32 %v1566_v32, %v1420_v3 }
 0x34a   :  { %v1452_v44 = vmax.f32 %v1436_v6, 0.0 }
 0x34b   :  { %v1373_v25 = vpop.f32.mrf.mxu2 }
 0x34c   :  { %1468 = vst.msk [vmem:[%s2458_s10 + $0x58] sm:$0xff] %vm69_vm0, %v1452_v44  ;;  %v1401_v34 = vmul.f32 %v2304_v15, %v1373_v25 }
 0x34e   :  { %v1421_v20 = vadd.f32 %v2310_v35, %v1401_v34 }
 0x350   :  { %v1437_v21 = vadd.f32 %v1567_v40, %v1421_v20 }
 0x352   :  { %v1453_v39 = vmax.f32 %v1437_v21, 0.0 }
 0x354   :  { %1469 = vst.msk [vmem:[%s2458_s10 + $0x60] sm:$0xff] %vm69_vm0, %v1453_v39 }
 0x357   :  { %v1382_v27 = vpop.f32.mrf.mxu3 }
 0x358   :  { %v1404_v49 = vmul.f32 %v2304_v15, %v1382_v27 }
 0x35a   :  { %v1424_v38 = vadd.f32 %v2310_v35, %v1404_v49 }
 0x35c   :  { %v1440_v4 = vadd.f32 %v1568_v16, %v1424_v38 }
 0x35e   :  { %v1456_v42 = vmax.f32 %v1440_v4, 0.0 }
 0x360   :  { %1472 = vst.msk [vmem:[%s2458_s10 + $0x78] sm:$0xff] %vm69_vm0, %v1456_v42 }
 0x361   :  { %1477 = vsyncpa [#allocation4], 1 }

</bundles_post_ra>
